<compile_context>
chip_gen: v7x
topology: tpu7x:2x2x1
jax: 0.10.0
libtpu: 0.0.40
codegen_flags: <defaults>
</compile_context>

<pallas_src>
import jax
import jax.numpy as jnp
from jax.experimental import pallas as pl
from jax.experimental.pallas import tpu as pltpu

# A-tile sizes.  256x512 bf16 A tiles = 256 KiB per buffer (x2 for double
# buffering) -> well under the scoped VMEM limit on v5e/v6e (128 MiB) and
# v7x (64 MiB), while feeding the 256-wide MXU with full-width operands.
_TM = 256   # node-row tile (output rows)
_TK = 512   # A-column / XW-row reduction tile


def _round_up(x, m):
    return ((x + m - 1) // m) * m


def _xw_kernel(x_ref, w_ref, o_ref):
    """Pass 1: XW = X @ W_arch  (bf16 in, f32 MXU accumulate, bf16 out)."""
    o_ref[...] = jnp.dot(x_ref[...], w_ref[...],
                         preferred_element_type=jnp.float32).astype(o_ref.dtype)


def _agg_head_kernel(task_ref, adj_ref, xw_ref, w_head_ref, b_head_ref,
                     out_ref, acc_ref):
    """Pass 2: out = relu(A @ XW) @ W_head[task] + b_head[task]."""
    del task_ref  # consumed by the index_maps (head selection), not the body
    k = pl.program_id(1)

    # Zero the f32 accumulator at the start of each row tile's reduction.
    @pl.when(k == 0)
    def _():
        acc_ref[...] = jnp.zeros_like(acc_ref)

    # Partial graph aggregation:  acc += A_tile @ XW_tile  (bf16 in, f32 acc)
    acc_ref[...] += jnp.dot(adj_ref[...], xw_ref[...],
                            preferred_element_type=jnp.float32)

    # Finalize once per row tile: ReLU + task head + bias.
    @pl.when(k == pl.num_programs(1) - 1)
    def _():
        h = jnp.maximum(acc_ref[...], 0.0).astype(jnp.bfloat16)
        logits = jnp.dot(h, w_head_ref[0], preferred_element_type=jnp.float32)
        out_ref[...] = logits + b_head_ref[0]          # bias broadcast


@jax.jit
def manager_forward(adj_norm, features, w_arch, w_heads, b_heads, task):
    """Manager.forward: h = arch(g, x); logits = predict[task](h).

    adj_norm : (N, N) normalized dense adjacency (graph `g`)
    features : (N, F) node features
    w_arch   : (F, H) stand-in GCN weight of the `arch` backbone
    w_heads  : (n_tasks, H, C) stacked Linear-head weights (self.predict)
    b_heads  : (n_tasks, 1, C) stacked Linear-head biases
    task     : scalar task index (selects the head at runtime)
    """
    n, f_in = features.shape
    h_dim = w_arch.shape[1]
    n_tasks, _, n_class = w_heads.shape

    # Pad to TPU-friendly shapes (lane dims multiples of 128, node dim a
    # multiple of the A tiles).  Zero padding is numerically inert here.
    n_pad = _round_up(n, max(_TM, _TK))
    f_pad = _round_up(f_in, 128)
    hd_pad = _round_up(h_dim, 128)
    c_pad = _round_up(n_class, 128)

    adj_p = jnp.zeros((n_pad, n_pad), jnp.bfloat16)
    adj_p = adj_p.at[:n, :n].set(adj_norm.astype(jnp.bfloat16))
    x_p = jnp.zeros((n_pad, f_pad), jnp.bfloat16)
    x_p = x_p.at[:n, :f_in].set(features.astype(jnp.bfloat16))
    w_arch_p = jnp.zeros((f_pad, hd_pad), jnp.bfloat16)
    w_arch_p = w_arch_p.at[:f_in, :h_dim].set(w_arch.astype(jnp.bfloat16))
    w_heads_p = jnp.zeros((n_tasks, hd_pad, c_pad), jnp.bfloat16)
    w_heads_p = w_heads_p.at[:, :h_dim, :n_class].set(
        w_heads.astype(jnp.bfloat16))
    b_heads_p = jnp.zeros((n_tasks, 1, c_pad), jnp.float32)
    b_heads_p = b_heads_p.at[:, :, :n_class].set(b_heads.astype(jnp.float32))

    task_idx = jnp.asarray(task, jnp.int32).reshape((1,))
    vmem_cap = 32 * 1024 * 1024

    # ---- Pass 1: XW = X @ W_arch  (computed once, reused by every row tile)
    xw = pl.pallas_call(
        _xw_kernel,
        out_shape=jax.ShapeDtypeStruct((n_pad, hd_pad), jnp.bfloat16),
        grid_spec=pltpu.PrefetchScalarGridSpec(
            num_scalar_prefetch=0,
            grid=(n_pad // _TM,),
            in_specs=[
                pl.BlockSpec((_TM, f_pad), lambda i: (i, 0)),
                pl.BlockSpec((f_pad, hd_pad), lambda i: (0, 0)),  # resident
            ],
            out_specs=pl.BlockSpec((_TM, hd_pad), lambda i: (i, 0)),
        ),
        compiler_params=pltpu.CompilerParams(
            dimension_semantics=("parallel",),
            vmem_limit_bytes=vmem_cap,
        ),
    )(x_p, w_arch_p)

    # ---- Pass 2: relu(A @ XW) @ W_head[task] + b_head[task]
    grid = (n_pad // _TM, n_pad // _TK)
    out_p = pl.pallas_call(
        _agg_head_kernel,
        out_shape=jax.ShapeDtypeStruct((n_pad, c_pad), jnp.float32),
        grid_spec=pltpu.PrefetchScalarGridSpec(
            num_scalar_prefetch=1,          # task index -> SMEM
            grid=grid,
            in_specs=[
                # A tile streams over both grid axes.
                pl.BlockSpec((_TM, _TK), lambda i, k, t: (i, k)),
                # XW tile streams over the reduction axis only.
                pl.BlockSpec((_TK, hd_pad), lambda i, k, t: (k, 0)),
                # Task head weight/bias selected via scalar prefetch; resident.
                pl.BlockSpec((1, hd_pad, c_pad), lambda i, k, t: (t[0], 0, 0)),
                pl.BlockSpec((1, 1, c_pad), lambda i, k, t: (t[0], 0, 0)),
            ],
            out_specs=pl.BlockSpec((_TM, c_pad), lambda i, k, t: (i, 0)),
            scratch_shapes=[pltpu.VMEM((_TM, hd_pad), jnp.float32)],
        ),
        compiler_params=pltpu.CompilerParams(
            dimension_semantics=("parallel", "arbitrary"),
            vmem_limit_bytes=vmem_cap,
        ),
    )(task_idx, adj_p, xw, w_heads_p, b_heads_p)

    # Strip padding: real nodes, real classes.
    return out_p[:n, :n_class]


def _linear_init(key, fan_in, fan_out):
    """Deterministic torch.nn.Linear-style init: U(-1/sqrt(fan_in), +)."""
    kw, kb = jax.random.split(key)
    bound = 1.0 / jnp.sqrt(float(fan_in))
    w = jax.random.uniform(kw, (fan_in, fan_out), jnp.float32, -bound, bound)
    b = jax.random.uniform(kb, (1, fan_out), jnp.float32, -bound, bound)
    return w, b


if __name__ == "__main__":
    # Small shapes consistent with the module.
    N_NODES = 16        # graph nodes
    F_IN = 32           # raw feature dim (input to arch)
    IN_FEAT = 32        # arch output dim == Linear head input dim
    TASKCLA = [(0, 8, None), (1, 8, None)]   # (task, n_class, _)
    TASK = 1

    key = jax.random.PRNGKey(0)
    k_feat, k_adj, k_arch, *k_heads = jax.random.split(key, 3 + len(TASKCLA))

    # Node features.
    features = jax.random.normal(k_feat, (N_NODES, F_IN), jnp.float32)

    # Symmetric-normalized adjacency with self-loops:  D^-1/2 (A+I) D^-1/2
    a = (jax.random.uniform(k_adj, (N_NODES, N_NODES)) > 0.7).astype(jnp.float32)
    a = jnp.maximum(a, a.T) + jnp.eye(N_NODES, dtype=jnp.float32)
    a = jnp.minimum(a, 1.0)
    d_inv_sqrt = 1.0 / jnp.sqrt(a.sum(axis=1))
    adj_norm = (a * d_inv_sqrt[:, None]) * d_inv_sqrt[None, :]

    # arch stand-in weights (one GCN layer) + per-task Linear heads (predict).
    w_arch, _ = _linear_init(k_arch, F_IN, IN_FEAT)
    heads = [_linear_init(k_heads[i], IN_FEAT, n_class)
             for i, (_, n_class, _) in enumerate(TASKCLA)]
    w_heads = jnp.stack([w for w, _ in heads])   # (n_tasks, IN_FEAT, n_class)
    b_heads = jnp.stack([b for _, b in heads])   # (n_tasks, 1, n_class)

    logits = manager_forward(adj_norm, features, w_arch, w_heads, b_heads, TASK)
    logits = jax.block_until_ready(logits)

    # Sanity check vs plain-JAX reference with the same bf16 input rounding
    # and the same association (A @ (X @ W_arch)).
    adj_b = adj_norm.astype(jnp.bfloat16).astype(jnp.float32)
    x_b = features.astype(jnp.bfloat16).astype(jnp.float32)
    wa_b = w_arch.astype(jnp.bfloat16).astype(jnp.float32)
    wh_b = w_heads[TASK].astype(jnp.bfloat16).astype(jnp.float32)
    xw_ref = (x_b @ wa_b).astype(jnp.bfloat16).astype(jnp.float32)
    h_ref = jnp.maximum(adj_b @ xw_ref, 0.0).astype(jnp.bfloat16).astype(jnp.float32)
    ref = h_ref @ wh_b + b_heads[TASK]

    assert logits.shape == (N_NODES, TASKCLA[TASK][1])
    assert jnp.allclose(logits, ref, atol=2e-2, rtol=2e-2), \
        float(jnp.max(jnp.abs(logits - ref)))

    print("KERNEL_OK")
</pallas_src>

<mosaic_0001>
module attributes {stable_mosaic.version = 11 : i64} {
  func.func @_xw_kernel(%arg0: i32, %arg1: memref<256x128xbf16, #tpu.memory_space<vmem>>, %arg2: memref<128x128xbf16, #tpu.memory_space<vmem>>, %arg3: memref<256x128xbf16, #tpu.memory_space<vmem>>) attributes {dimension_semantics = [#tpu.dimension_semantics<parallel>], iteration_bounds = array<i64: 2>, scalar_prefetch = 0 : i64, scratch_operands = 0 : i64, tpu.core_type = #tpu.core_type<tc>, window_params = [{transform_indices = @transform_0, window_bounds = array<i64: 256, 128>}, {pipeline_mode = #tpu.pipeline_mode<synchronous>, transform_indices = @transform_1, window_bounds = array<i64: 128, 128>}, {transform_indices = @transform_2, window_bounds = array<i64: 256, 128>}]} {
    %c0 = arith.constant 0 : index
    %c0_0 = arith.constant 0 : index
    %0 = vector.load %arg1[%c0, %c0_0] : memref<256x128xbf16, #tpu.memory_space<vmem>>, vector<256x128xbf16>
    %c0_1 = arith.constant 0 : index
    %c0_2 = arith.constant 0 : index
    %1 = vector.load %arg2[%c0_1, %c0_2] : memref<128x128xbf16, #tpu.memory_space<vmem>>, vector<128x128xbf16>
    %cst = arith.constant dense<0.000000e+00> : vector<256x128xf32>
    %2 = tpu.matmul %0, %1, %cst {dimension_numbers = #tpu.dot_dimension_numbers<[1], [0], [0], [1], [0, 0, 1, 1], [], []>} : vector<256x128xbf16>, vector<128x128xbf16>, vector<256x128xf32> -> vector<256x128xf32>
    %3 = arith.truncf %2 : vector<256x128xf32> to vector<256x128xbf16>
    %c0_3 = arith.constant 0 : index
    %c0_4 = arith.constant 0 : index
    %4 = vector.load %arg3[%c0_3, %c0_4] : memref<256x128xbf16, #tpu.memory_space<vmem>>, vector<256x128xbf16>
    tpu.vector_store %arg3[%c0_3, %c0_4], %3 {strides = array<i32>} : memref<256x128xbf16, #tpu.memory_space<vmem>>, vector<256x128xbf16>,
    return
  }
  func.func @transform_0(%arg0: i32) -> (i32, i32) {
    %c0_i32 = arith.constant 0 : i32
    %c0_i32_0 = arith.constant 0 : i32
    return %arg0, %c0_i32 : i32, i32
  }
  func.func @transform_1(%arg0: i32) -> (i32, i32) {
    %c0_i32 = arith.constant 0 : i32
    %c0_i32_0 = arith.constant 0 : i32
    %c0_i32_1 = arith.constant 0 : i32
    return %c0_i32, %c0_i32_0 : i32, i32
  }
  func.func @transform_2(%arg0: i32) -> (i32, i32) {
    %c0_i32 = arith.constant 0 : i32
    %c0_i32_0 = arith.constant 0 : i32
    return %arg0, %c0_i32 : i32, i32
  }
}

module attributes {stable_mosaic.version = 11 : i64} {
  func.func @_agg_head_kernel(%arg0: i32, %arg1: i32, %arg2: memref<1xi32, #tpu.memory_space<smem>>, %arg3: memref<256x512xbf16, #tpu.memory_space<vmem>>, %arg4: memref<512x128xbf16, #tpu.memory_space<vmem>>, %arg5: memref<1x128x128xbf16, #tpu.memory_space<vmem>>, %arg6: memref<1x1x128xf32, #tpu.memory_space<vmem>>, %arg7: memref<256x128xf32, #tpu.memory_space<vmem>>, %arg8: memref<256x128xf32, #tpu.memory_space<vmem>>) attributes {dimension_semantics = [#tpu.dimension_semantics<parallel>, #tpu.dimension_semantics<arbitrary>], iteration_bounds = array<i64: 2, 1>, scalar_prefetch = 1 : i64, scratch_operands = 1 : i64, tpu.core_type = #tpu.core_type<tc>, window_params = [{transform_indices = @transform_0, window_bounds = array<i64: 256, 512>}, {transform_indices = @transform_1, window_bounds = array<i64: 512, 128>}, {transform_indices = @transform_2, window_bounds = array<i64: 1, 128, 128>}, {transform_indices = @transform_3, window_bounds = array<i64: 1, 1, 128>}, {transform_indices = @transform_4, window_bounds = array<i64: 256, 128>}]} {
    %c0_i32 = arith.constant 0 : i32
    %0 = arith.cmpi eq, %arg1, %c0_i32 : i32
    %1 = arith.extui %0 : i1 to i32
    %c0_i32_0 = arith.constant 0 : i32
    %2 = arith.cmpi ne, %1, %c0_i32_0 : i32
    scf.if %2 {
      %cst_10 = arith.constant 0.000000e+00 : f32
      %12 = vector.broadcast %cst_10 : f32 to vector<256x128xf32>
      %c0_11 = arith.constant 0 : index
      %c0_12 = arith.constant 0 : index
      %13 = vector.load %arg8[%c0_11, %c0_12] : memref<256x128xf32, #tpu.memory_space<vmem>>, vector<256x128xf32>
      tpu.vector_store %arg8[%c0_11, %c0_12], %12 {strides = array<i32>} : memref<256x128xf32, #tpu.memory_space<vmem>>, vector<256x128xf32>,
    } else {
    }
    %c0 = arith.constant 0 : index
    %c0_1 = arith.constant 0 : index
    %3 = vector.load %arg8[%c0, %c0_1] : memref<256x128xf32, #tpu.memory_space<vmem>>, vector<256x128xf32>
    %c0_2 = arith.constant 0 : index
    %c0_3 = arith.constant 0 : index
    %4 = vector.load %arg3[%c0_2, %c0_3] : memref<256x512xbf16, #tpu.memory_space<vmem>>, vector<256x512xbf16>
    %c0_4 = arith.constant 0 : index
    %c0_5 = arith.constant 0 : index
    %5 = vector.load %arg4[%c0_4, %c0_5] : memref<512x128xbf16, #tpu.memory_space<vmem>>, vector<512x128xbf16>
    %cst = arith.constant dense<0.000000e+00> : vector<256x128xf32>
    %6 = tpu.matmul %4, %5, %cst {dimension_numbers = #tpu.dot_dimension_numbers<[1], [0], [0], [1], [0, 0, 1, 1], [], []>} : vector<256x512xbf16>, vector<512x128xbf16>, vector<256x128xf32> -> vector<256x128xf32>
    %7 = arith.addf %3, %6 : vector<256x128xf32>
    %c0_6 = arith.constant 0 : index
    %c0_7 = arith.constant 0 : index
    %8 = vector.load %arg8[%c0_6, %c0_7] : memref<256x128xf32, #tpu.memory_space<vmem>>, vector<256x128xf32>
    tpu.vector_store %arg8[%c0_6, %c0_7], %7 {strides = array<i32>} : memref<256x128xf32, #tpu.memory_space<vmem>>, vector<256x128xf32>,
    %c0_i32_8 = arith.constant 0 : i32
    %9 = arith.cmpi eq, %arg1, %c0_i32_8 : i32
    %10 = arith.extui %9 : i1 to i32
    %c0_i32_9 = arith.constant 0 : i32
    %11 = arith.cmpi ne, %10, %c0_i32_9 : i32
    scf.if %11 {
      %c0_10 = arith.constant 0 : index
      %c0_11 = arith.constant 0 : index
      %12 = vector.load %arg8[%c0_10, %c0_11] : memref<256x128xf32, #tpu.memory_space<vmem>>, vector<256x128xf32>
      %cst_12 = arith.constant 0.000000e+00 : f32
      %13 = vector.broadcast %cst_12 : f32 to vector<256x128xf32>
      %14 = arith.maximumf %12, %13 : vector<256x128xf32>
      %15 = arith.truncf %14 : vector<256x128xf32> to vector<256x128xbf16>
      %c0_13 = arith.constant 0 : index
      %c0_14 = arith.constant 0 : index
      %c0_15 = arith.constant 0 : index
      %16 = vector.load %arg5[%c0_13, %c0_14, %c0_15] : memref<1x128x128xbf16, #tpu.memory_space<vmem>>, vector<1x128x128xbf16>
      %17 = vector.shape_cast %16 : vector<1x128x128xbf16> to vector<128x128xbf16>
      %cst_16 = arith.constant dense<0.000000e+00> : vector<256x128xf32>
      %18 = tpu.matmul %15, %17, %cst_16 {dimension_numbers = #tpu.dot_dimension_numbers<[1], [0], [0], [1], [0, 0, 1, 1], [], []>} : vector<256x128xbf16>, vector<128x128xbf16>, vector<256x128xf32> -> vector<256x128xf32>
      %c0_17 = arith.constant 0 : index
      %c0_18 = arith.constant 0 : index
      %c0_19 = arith.constant 0 : index
      %19 = vector.load %arg6[%c0_17, %c0_18, %c0_19] : memref<1x1x128xf32, #tpu.memory_space<vmem>>, vector<1x1x128xf32>
      %20 = vector.shape_cast %19 : vector<1x1x128xf32> to vector<1x128xf32>
      %21 = vector.broadcast %20 : vector<1x128xf32> to vector<256x128xf32>
      %22 = arith.addf %18, %21 : vector<256x128xf32>
      %c0_20 = arith.constant 0 : index
      %c0_21 = arith.constant 0 : index
      %23 = vector.load %arg7[%c0_20, %c0_21] : memref<256x128xf32, #tpu.memory_space<vmem>>, vector<256x128xf32>
      tpu.vector_store %arg7[%c0_20, %c0_21], %22 {strides = array<i32>} : memref<256x128xf32, #tpu.memory_space<vmem>>, vector<256x128xf32>,
    } else {
    }
    return
  }
  func.func @transform_0(%arg0: i32, %arg1: i32, %arg2: memref<1xi32, #tpu.memory_space<smem>>) -> (i32, i32) {
    %c0_i32 = arith.constant 0 : i32
    return %arg0, %arg1 : i32, i32
  }
  func.func @transform_1(%arg0: i32, %arg1: i32, %arg2: memref<1xi32, #tpu.memory_space<smem>>) -> (i32, i32) {
    %c0_i32 = arith.constant 0 : i32
    %c0_i32_0 = arith.constant 0 : i32
    return %arg1, %c0_i32 : i32, i32
  }
  func.func @transform_2(%arg0: i32, %arg1: i32, %arg2: memref<1xi32, #tpu.memory_space<smem>>) -> (i32, i32, i32) {
    %c0 = arith.constant 0 : index
    %0 = memref.load %arg2[%c0] : memref<1xi32, #tpu.memory_space<smem>>
    %c0_i32 = arith.constant 0 : i32
    %c0_i32_0 = arith.constant 0 : i32
    %c0_i32_1 = arith.constant 0 : i32
    return %0, %c0_i32, %c0_i32_0 : i32, i32, i32
  }
  func.func @transform_3(%arg0: i32, %arg1: i32, %arg2: memref<1xi32, #tpu.memory_space<smem>>) -> (i32, i32, i32) {
    %c0 = arith.constant 0 : index
    %0 = memref.load %arg2[%c0] : memref<1xi32, #tpu.memory_space<smem>>
    %c0_i32 = arith.constant 0 : i32
    %c0_i32_0 = arith.constant 0 : i32
    %c0_i32_1 = arith.constant 0 : i32
    return %0, %c0_i32, %c0_i32_0 : i32, i32, i32
  }
  func.func @transform_4(%arg0: i32, %arg1: i32, %arg2: memref<1xi32, #tpu.memory_space<smem>>) -> (i32, i32) {
    %c0_i32 = arith.constant 0 : i32
    %c0_i32_0 = arith.constant 0 : i32
    return %arg0, %c0_i32 : i32, i32
  }
}

</mosaic_0001>

<bundles_post_ra>
// kernel: manager_forward.2
= control target key start
LH: loop header
LB: loop body
LE: loop exit
PB: predicated region body
PF: predicated region fallthrough
CT: control target
= control target key end

     0   :  { %s1054_s9 = smov 0   ;;  %s1138_s0 = inlined_call_operand.vmem [shape: bf16[512,128], index: 0, kind: input, shape index: {}]   ;;  %s1139_s1 = inlined_call_operand.vmem [shape: bf16[128,128], index: 1, kind: input, shape index: {}]   ;;  %s1140_s2 = inlined_call_operand.vmem [shape: bf16[512,128], index: 2, kind: output, shape index: {}]  }
   0x1 LB: > { %s717_s10 = sadd.s32 4294967295, %s1037_s9   ;;  %p721_p0 = scmp.ge.s32.totalorder %s1037_s9, 1  ;;  %s1037_s9 = sphi %s1054_s9, %s12_s9  }
   0x2   : > { %p113_p1 = scmp.lt.s32.totalorder %s1037_s9, 3 }
   0x4   : > { %p114_p2 = pnand %p721_p0, %p113_p1 }
   0x5   : > { %v1007_v0 = vld [vmem:[%s1139_s1] sm:$0xff] (!%p114_p2)   ;;  %s722_s13 = sshll.u32 (!%p114_p2), %s717_s10, 5  ;;  %v1008_v1 = vld [vmem:[%s1139_s1 + $0x8] sm:$0xff] (!%p114_p2)   ;;  %v1009_v2 = vld [vmem:[%s1139_s1 + $0x10] sm:$0xff] (!%p114_p2)  }
   0x6   : > { %117 = sbr.rel (%p114_p2) target bundleno = 280 (0x118), region = 28  ;;  %p136_p3 = scmp.lt.s32.totalorder (!%p114_p2), %s722_s13, 63  ;;  %935 = vmatprep.subr.bf16.mxu0 (!%p114_p2), %v1007_v0  ;;  %983 = vmatprep.subr.bf16.mxu1 (!%p114_p2), %v1007_v0  ;;  %v1010_v3 = vld [vmem:[%s1139_s1 + $0x18] sm:$0xff] (!%p114_p2)   ;;  %v1011_v6 = vld [vmem:[%s1139_s1 + $0x20] sm:$0xff] (!%p114_p2)   ;;  %v1012_v7 = vld [vmem:[%s1139_s1 + $0x28] sm:$0xff] (!%p114_p2)  }
   0x7   : > { %936 = vmatpush3.bf16.msra.mxu0 (!%p114_p2), %v1007_v0  ;;  %991 = vmatpush3.bf16.msra.mxu1 (!%p114_p2), %v1007_v0  ;;  %v1013_v8 = vld [vmem:[%s1139_s1 + $0x30] sm:$0xff] (!%p114_p2)   ;;  %v1014_v9 = vld [vmem:[%s1139_s1 + $0x38] sm:$0xff] (!%p114_p2)  }
   0x8   : > { %937 = vmatprep.subr.bf16.mxu0 (!%p114_p2), %v1008_v1  ;;  %984 = vmatprep.subr.bf16.mxu1 (!%p114_p2), %v1008_v1 }
   0xb   : > { %938 = vmatpush3.bf16.msra.mxu0 (!%p114_p2), %v1008_v1  ;;  %992 = vmatpush3.bf16.msra.mxu1 (!%p114_p2), %v1008_v1 }
   0xc   : > { %939 = vmatprep.subr.bf16.mxu0 (!%p114_p2), %v1009_v2  ;;  %985 = vmatprep.subr.bf16.mxu1 (!%p114_p2), %v1009_v2 }
   0xd   : > { %s1142_s13 = smov (!%p136_p3, %s722_s13), 63 }
   0xe   : > { %s723_s18 = sshll.u32 %s1142_s13, 2 }
   0xf   : > { %s1079_s21 = scalar_lea.vmem %s1138_s0, %s723_s18  ;;  %940 = vmatpush3.bf16.msra.mxu0 %v1009_v2  ;;  %993 = vmatpush3.bf16.msra.mxu1 %v1009_v2  ;;  %s1117_s6 = scalar_lea.vmem %s1140_s2, %s723_s18 }
  0x10   : > { %v1015_v4 = vld [vmem:[%s1079_s21] sm:$0xff]   ;;  %941 = vmatprep.subr.bf16.mxu0 %v1010_v3  ;;  %986 = vmatprep.subr.bf16.mxu1 %v1010_v3  ;;  %v1017_v10 = vld [vmem:[%s1079_s21 + $0x8] sm:$0xff]   ;;  %v1019_v12 = vld [vmem:[%s1079_s21 + $0x10] sm:$0xff]  }
  0x11   : > { %v1016_v5 = vld [vmem:[%s1079_s21 + $0x40] sm:$0xff]   ;;  %951 = vmatprep.mubr.bf16.mxu0 %v1015_v4  ;;  %v1018_v11 = vld [vmem:[%s1079_s21 + $0x48] sm:$0xff]   ;;  %v1020_v13 = vld [vmem:[%s1079_s21 + $0x50] sm:$0xff]  }
  0x12   : > { %967 = vmatprep.mubr.bf16.mxu1 %v1016_v5  ;;  %v1021_v14 = vld [vmem:[%s1079_s21 + $0x18] sm:$0xff]   ;;  %v1023_v16 = vld [vmem:[%s1079_s21 + $0x20] sm:$0xff]   ;;  %v1025_v18 = vld [vmem:[%s1079_s21 + $0x28] sm:$0xff]  }
  0x13   : > { %942 = vmatpush3.bf16.msra.mxu0 %v1010_v3  ;;  %994 = vmatpush3.bf16.msra.mxu1 %v1010_v3  ;;  %v1022_v15 = vld [vmem:[%s1079_s21 + $0x58] sm:$0xff]   ;;  %v1024_v17 = vld [vmem:[%s1079_s21 + $0x60] sm:$0xff]   ;;  %v1026_v19 = vld [vmem:[%s1079_s21 + $0x68] sm:$0xff]  }
  0x14   : > { %943 = vmatprep.subr.bf16.mxu0 %v1011_v6  ;;  %987 = vmatprep.subr.bf16.mxu1 %v1011_v6  ;;  %v1027_v20 = vld [vmem:[%s1079_s21 + $0x30] sm:$0xff]   ;;  %v1029_v22 = vld [vmem:[%s1079_s21 + $0x38] sm:$0xff]  }
  0x15   : > { %v1028_v21 = vld [vmem:[%s1079_s21 + $0x70] sm:$0xff]   ;;  %v1030_v23 = vld [vmem:[%s1079_s21 + $0x78] sm:$0xff]  }
  0x17   : > { %944 = vmatpush3.bf16.msra.mxu0 %v1011_v6  ;;  %995 = vmatpush3.bf16.msra.mxu1 %v1011_v6 }
  0x18   : > { %945 = vmatprep.subr.bf16.mxu0 %v1012_v7  ;;  %988 = vmatprep.subr.bf16.mxu1 %v1012_v7 }
  0x1b   : > { %946 = vmatpush3.bf16.msra.mxu0 %v1012_v7  ;;  %996 = vmatpush3.bf16.msra.mxu1 %v1012_v7 }
  0x1c   : > { %947 = vmatprep.subr.bf16.mxu0 %v1013_v8  ;;  %989 = vmatprep.subr.bf16.mxu1 %v1013_v8 }
  0x1f   : > { %948 = vmatpush3.bf16.msra.mxu0 %v1013_v8  ;;  %997 = vmatpush3.bf16.msra.mxu1 %v1013_v8 }
  0x20   : > { %949 = vmatprep.subr.bf16.mxu0 %v1014_v9  ;;  %990 = vmatprep.subr.bf16.mxu1 %v1014_v9 }
  0x23   : > { %950 = vmatpush3.bf16.msra.mxu0 %v1014_v9  ;;  %998 = vmatpush3.bf16.msra.mxu1 %v1014_v9 }
  0x26   : > { %952 = vmatmul.mubr.bf16.vlgmr.msra.gmra.mrb[0].mxu0 %v1017_v10  ;;  %968 = vmatmul.mubr.bf16.vlgmr.msra.gmra.mrb[0].mxu1 %v1018_v11 }
  0x27   : > { %955 = vmatprep.mubr.bf16.mxu0 %v1019_v12  ;;  %971 = vmatprep.mubr.bf16.mxu1 %v1020_v13 }
  0x2e   : > { %956 = vmatmul.mubr.bf16.gmra.mrb[4].mxu0 %v1021_v14  ;;  %972 = vmatmul.mubr.bf16.gmra.mrb[4].mxu1 %v1022_v15 }
  0x2f   : > { %959 = vmatprep.mubr.bf16.mxu0 %v1023_v16  ;;  %975 = vmatprep.mubr.bf16.mxu1 %v1024_v17 }
  0x36   : > { %960 = vmatmul.mubr.bf16.gmra.mrb[8].mxu0 %v1025_v18  ;;  %976 = vmatmul.mubr.bf16.gmra.mrb[8].mxu1 %v1026_v19 }
  0x37   : > { %963 = vmatprep.mubr.bf16.mxu0 %v1027_v20  ;;  %979 = vmatprep.mubr.bf16.mxu1 %v1028_v21 }
  0x3e   : > { %964 = vmatmul.mubr.bf16.gmra.mrb[12].mxu0 %v1029_v22  ;;  %980 = vmatmul.mubr.bf16.gmra.mrb[12].mxu1 %v1030_v23 }
  0xf9   : > { %v953_v24 = vpop.f32.mrb[0].mxu0  ;;  %v969_v25 = vpop.f32.mrb[0].mxu1 }
  0xfa   : > { %v374_v26 = vpop.f32.mrb[1].mxu0  ;;  %v438_v27 = vpop.f32.mrb[1].mxu1 }
  0xfb   : > { %v954_v28 = vpop.f32.mrb[2].mxu0  ;;  %v970_v29 = vpop.f32.mrb[2].mxu1 }
  0xfc   : > { %v824_v30 = vpack.c.bf16 %v954_v28, %v953_v24  ;;  %v864_v31 = vpack.c.bf16 %v970_v29, %v969_v25  ;;  %v377_v32 = vpop.f32.mrb[3].mxu0  ;;  %v441_v33 = vpop.f32.mrb[3].mxu1 }
  0xfd   : > { %v819_v34 = vpack.c.bf16 %v377_v32, %v374_v26  ;;  %v859_v35 = vpack.c.bf16 %v441_v33, %v438_v27 }
  0xfe   : > { %896 = vst [vmem:[%s1117_s6 + $0x8] sm:$0xff] %v824_v30   ;;  %904 = vst [vmem:[%s1117_s6 + $0x48] sm:$0xff] %v864_v31  }
  0xff   : > { %820 = vst [vmem:[%s1117_s6] sm:$0xff] %v819_v34   ;;  %903 = vst [vmem:[%s1117_s6 + $0x40] sm:$0xff] %v859_v35  }
 0x101   : > { %v957_v36 = vpop.f32.mrb[4].mxu0  ;;  %v973_v37 = vpop.f32.mrb[4].mxu1 }
 0x102   : > { %v390_v38 = vpop.f32.mrb[5].mxu0  ;;  %v454_v39 = vpop.f32.mrb[5].mxu1 }
 0x103   : > { %v958_v40 = vpop.f32.mrb[6].mxu0  ;;  %v974_v41 = vpop.f32.mrb[6].mxu1 }
 0x104   : > { %v834_v42 = vpack.c.bf16 %v958_v40, %v957_v36  ;;  %v874_v43 = vpack.c.bf16 %v974_v41, %v973_v37  ;;  %v393_v44 = vpop.f32.mrb[7].mxu0  ;;  %v457_v45 = vpop.f32.mrb[7].mxu1 }
 0x105   : > { %v829_v46 = vpack.c.bf16 %v393_v44, %v390_v38  ;;  %v869_v47 = vpack.c.bf16 %v457_v45, %v454_v39 }
 0x106   : > { %898 = vst [vmem:[%s1117_s6 + $0x18] sm:$0xff] %v834_v42   ;;  %906 = vst [vmem:[%s1117_s6 + $0x58] sm:$0xff] %v874_v43  }
 0x107   : > { %897 = vst [vmem:[%s1117_s6 + $0x10] sm:$0xff] %v829_v46   ;;  %905 = vst [vmem:[%s1117_s6 + $0x50] sm:$0xff] %v869_v47  }
 0x109   : > { %v961_v48 = vpop.f32.mrb[8].mxu0  ;;  %v977_v49 = vpop.f32.mrb[8].mxu1 }
 0x10a   : > { %v406_v50 = vpop.f32.mrb[9].mxu0  ;;  %v470_v51 = vpop.f32.mrb[9].mxu1 }
 0x10b   : > { %v962_v52 = vpop.f32.mrb[10].mxu0  ;;  %v978_v53 = vpop.f32.mrb[10].mxu1 }
 0x10c   : > { %v844_v54 = vpack.c.bf16 %v962_v52, %v961_v48  ;;  %v884_v55 = vpack.c.bf16 %v978_v53, %v977_v49  ;;  %v409_v56 = vpop.f32.mrb[11].mxu0  ;;  %v473_v57 = vpop.f32.mrb[11].mxu1 }
 0x10d   : > { %v839_v58 = vpack.c.bf16 %v409_v56, %v406_v50  ;;  %v879_v59 = vpack.c.bf16 %v473_v57, %v470_v51 }
 0x10e   : > { %900 = vst [vmem:[%s1117_s6 + $0x28] sm:$0xff] %v844_v54   ;;  %908 = vst [vmem:[%s1117_s6 + $0x68] sm:$0xff] %v884_v55  }
 0x10f   : > { %899 = vst [vmem:[%s1117_s6 + $0x20] sm:$0xff] %v839_v58   ;;  %907 = vst [vmem:[%s1117_s6 + $0x60] sm:$0xff] %v879_v59  }
 0x111   : > { %v965_v60 = vpop.f32.mrb[12].mxu0  ;;  %v981_v61 = vpop.f32.mrb[12].mxu1 }
 0x112   : > { %v422_v62 = vpop.f32.mrb[13].mxu0  ;;  %v486_v63 = vpop.f32.mrb[13].mxu1 }
 0x113   : > { %v966_v0 = vpop.f32.mrb[14].mxu0  ;;  %v982_v1 = vpop.f32.mrb[14].mxu1 }
 0x114   : > { %v854_v2 = vpack.c.bf16 %v966_v0, %v965_v60  ;;  %v894_v3 = vpack.c.bf16 %v982_v1, %v981_v61  ;;  %v425_v4 = vpop.f32.mrb[15].mxu0  ;;  %v489_v5 = vpop.f32.mrb[15].mxu1 }
 0x115   : > { %v849_v6 = vpack.c.bf16 %v425_v4, %v422_v62  ;;  %v889_v7 = vpack.c.bf16 %v489_v5, %v486_v63 }
 0x116   : > { %902 = vst [vmem:[%s1117_s6 + $0x38] sm:$0xff] %v854_v2   ;;  %910 = vst [vmem:[%s1117_s6 + $0x78] sm:$0xff] %v894_v3  }
 0x117   : > { %901 = vst [vmem:[%s1117_s6 + $0x30] sm:$0xff] %v849_v6   ;;  %909 = vst [vmem:[%s1117_s6 + $0x70] sm:$0xff] %v889_v7  }
 0x118 PF: > { %s12_s9 = sadd.s32 1, %s1037_s9  }
 0x119   : > { %p9_p4 = scmp.ge.s32.totalorder %s12_s9, 4  }
 0x11b   :  { %11 = sbr.rel (!%p9_p4) target bundleno = 1 (0x1), region = 58 }

// kernel: manager_forward.3
= control target key start
LH: loop header
LB: loop body
LE: loop exit
PB: predicated region body
PF: predicated region fallthrough
CT: control target
= control target key end

     0   :  { %s2510_s20 = smov 0   ;;  %s2512_s21 = smov 0   ;;  %s2821_s0 = inlined_call_operand.<no memory space> [shape: s32[1], index: 0, kind: input, shape index: {}]   ;;  %s2822_s1 = inlined_call_operand.vmem [shape: bf16[512,512], index: 1, kind: input, shape index: {}]   ;;  %s2823_s2 = inlined_call_operand.vmem [shape: bf16[512,128], index: 2, kind: input, shape index: {}]   ;;  %s2824_s3 = inlined_call_operand.vmem [shape: bf16[2,128,128], index: 3, kind: input, shape index: {}]   ;;  %s2825_s4 = inlined_call_operand.vmem [shape: f32[2,1,128], index: 4, kind: input, shape index: {}]   ;;  %s2826_s5 = inlined_call_operand.vmem [shape: f32[512,128], index: 5, kind: output, shape index: {}]  }
   0x1   :  { %10 = sst [smem:[#allocation4]] %s2821_s0  ;;  %s2514_s22 = smov 0  }
   0x2 LB: > { %s28_s0 = sadd.s32 1, %s2471_s21  ;;  %p1864_p0 = scmp.ge.s32.totalorder %s2475_s22, 1  ;;  %s2475_s22 = sphi %s2514_s22, %s16_s22   ;;  %s2471_s21 = sphi %s2512_s21, %s2828_s21   ;;  %s2467_s20 = sphi %s2510_s20, %s2827_s20  }
   0x3   : > { %p30_p1 = scmp.ge.s32.totalorder %s28_s0, 2  ;;  %p222_p2 = scmp.lt.s32.totalorder %s2475_s22, 3 }
   0x5   : > { %s2830_s0 = smov (%p30_p1, %s28_s0), 0  ;;  %p223_p3 = pnand %p1864_p0, %p222_p2 }
   0x6   : > { %v2317_v0 = vld [vmem:[%s2823_s2 + $0x40] sm:$0xff] (!%p223_p3)   ;;  %s1865_s25 = sshll.u32 (!%p223_p3), %s2467_s20, 5  ;;  %v2319_v2 = vld [vmem:[%s2823_s2 + $0x48] sm:$0xff] (!%p223_p3)   ;;  %v2321_v4 = vld [vmem:[%s2823_s2 + $0x50] sm:$0xff] (!%p223_p3)   ;;  %s286_s28 = sld [smem:[#allocation4]] (!%p223_p3) }
   0x7   : > { %226 = sbr.rel (%p223_p3) target bundleno = 632 (0x278), region = 36  ;;  %v2318_v1 = vld [vmem:[%s2823_s2] sm:$0xff] (!%p223_p3)   ;;  %2277 = vmatprep.subr.bf16.mxu1 (!%p223_p3), %v2317_v0  ;;  %1981 = vmatprep.subr.bf16.mxu0 (!%p223_p3), %v2317_v0  ;;  %v2320_v3 = vld [vmem:[%s2823_s2 + $0x8] sm:$0xff] (!%p223_p3)   ;;  %p270_p4 = scmp.lt.s32.totalorder (!%p223_p3), %s1865_s25, 63  ;;  %v2322_v5 = vld [vmem:[%s2823_s2 + $0x10] sm:$0xff] (!%p223_p3)  }
   0x8   : > { %2285 = vmatpush3.bf16.msra.mxu1 (!%p223_p3), %v2318_v1  ;;  %1982 = vmatpush3.bf16.msra.mxu0 (!%p223_p3), %v2318_v1  ;;  %v2323_v6 = vld [vmem:[%s2823_s2 + $0x58] sm:$0xff] (!%p223_p3)   ;;  %v2325_v8 = vld [vmem:[%s2823_s2 + $0x60] sm:$0xff] (!%p223_p3)   ;;  %v2327_v10 = vld [vmem:[%s2823_s2 + $0x68] sm:$0xff] (!%p223_p3)  }
   0x9   : > { %2278 = vmatprep.subr.bf16.mxu1 (!%p223_p3), %v2319_v2  ;;  %1983 = vmatprep.subr.bf16.mxu0 (!%p223_p3), %v2319_v2  ;;  %v2324_v7 = vld [vmem:[%s2823_s2 + $0x18] sm:$0xff] (!%p223_p3)   ;;  %v2326_v9 = vld [vmem:[%s2823_s2 + $0x20] sm:$0xff] (!%p223_p3)   ;;  %v2328_v12 = vld [vmem:[%s2823_s2 + $0x28] sm:$0xff] (!%p223_p3)  }
   0xa   : > { %v2329_v13 = vld [vmem:[%s2823_s2 + $0x70] sm:$0xff] (!%p223_p3)   ;;  %v2331_v15 = vld [vmem:[%s2823_s2 + $0x78] sm:$0xff] (!%p223_p3)   ;;  %v2336_v17 = vld [vmem:[%s2823_s2 + $0xc0] sm:$0xff] (!%p223_p3)  }
   0xb   : > { %v2330_v14 = vld [vmem:[%s2823_s2 + $0x30] sm:$0xff] (!%p223_p3)   ;;  %v2332_v16 = vld [vmem:[%s2823_s2 + $0x38] sm:$0xff] (!%p223_p3)   ;;  %v2337_v19 = vld [vmem:[%s2823_s2 + $0x80] sm:$0xff] (!%p223_p3)  }
   0xc   : > { %2286 = vmatpush3.bf16.msra.mxu1 (!%p223_p3), %v2320_v3  ;;  %1984 = vmatpush3.bf16.msra.mxu0 (!%p223_p3), %v2320_v3  ;;  %v2338_v21 = vld [vmem:[%s2823_s2 + $0xc8] sm:$0xff] (!%p223_p3)   ;;  %v2343_v24 = vld [vmem:[%s2823_s2 + $0xd0] sm:$0xff] (!%p223_p3)   ;;  %v2345_v28 = vld [vmem:[%s2823_s2 + $0xd8] sm:$0xff] (!%p223_p3)   ;;  %p287_p5 = scmp.lt.s32.totalorder (!%p223_p3), %s286_s28, 1 }
   0xd   : > { %2279 = vmatprep.subr.bf16.mxu1 (!%p223_p3), %v2321_v4  ;;  %1985 = vmatprep.subr.bf16.mxu0 (!%p223_p3), %v2321_v4  ;;  %v2339_v22 = vld [vmem:[%s2823_s2 + $0x88] sm:$0xff] (!%p223_p3)   ;;  %v2344_v25 = vld [vmem:[%s2823_s2 + $0x90] sm:$0xff] (!%p223_p3)   ;;  %v2346_v31 = vld [vmem:[%s2823_s2 + $0x98] sm:$0xff] (!%p223_p3)  }
   0xe   : > { %s2832_s25 = smov (!%p270_p4, %s1865_s25), 63  ;;  %v2350_v33 = vld [vmem:[%s2823_s2 + $0xe0] sm:$0xff]   ;;  %v2352_v38 = vld [vmem:[%s2823_s2 + $0xe8] sm:$0xff]   ;;  %v2357_v41 = vld [vmem:[%s2823_s2 + $0xf0] sm:$0xff]   ;;  %s2834_s28 = smov (!%p287_p5, %s286_s28), 1 }
   0xf   : > { %s1979_s15 = sshll.u32 %s2832_s25, 4  ;;  %v2351_v36 = vld [vmem:[%s2823_s2 + $0xa0] sm:$0xff]   ;;  %v2353_v39 = vld [vmem:[%s2823_s2 + $0xa8] sm:$0xff]   ;;  %v2358_v44 = vld [vmem:[%s2823_s2 + $0xb0] sm:$0xff]   ;;  %s1980_s29 = sshll.u32 %s2834_s28, 6 }
  0x10   : > { %2287 = vmatpush3.bf16.msra.mxu1 %v2322_v5  ;;  %1986 = vmatpush3.bf16.msra.mxu0 %v2322_v5  ;;  %s2561_s20 = scalar_lea.vmem %s2822_s1, %s1979_s15  ;;  %v2359_v46 = vld [vmem:[%s2823_s2 + $0xf8] sm:$0xff]   ;;  %s2691_s7 = scalar_lea.vmem %s2824_s3, %s1980_s29 }
  0x11   : > { %2280 = vmatprep.subr.bf16.mxu1 %v2323_v6  ;;  %1987 = vmatprep.subr.bf16.mxu0 %v2323_v6  ;;  %v2335_v11 = vld [vmem:[%s2561_s20 + $0x184] ss:$16 sps:$4 sm:$0xff]   ;;  %v2333_v18 = vld [vmem:[%s2561_s20 + $0x180] ss:$16 sps:$4 sm:$0xff]   ;;  %v2366_v45 = vld [vmem:[%s2561_s20 + $0xc] ss:$16 sps:$4 sm:$0xff]   ;;  %s296_s9 = scalar_lea.vmem %s2825_s4, %s2834_s28 }
  0x12   : > { %1141 = vmatprep.mubr.bf16.mxu1 %v2335_v11  ;;  %v2340_v20 = vld [vmem:[%s2561_s20 + $0x1a4] ss:$16 sps:$4 sm:$0xff]   ;;  %v2342_v23 = vld [vmem:[%s2561_s20 + $0x1a0] ss:$16 sps:$4 sm:$0xff]   ;;  %v2360_v47 = vld [vmem:[%s2823_s2 + $0xb8] sm:$0xff]   ;;  %s1871_s10 = sshll.u32 %s2832_s25, 3 }
  0x13   : > { %v2361_v26 = vld [vmem:[%s2561_s20] ss:$16 sps:$4 sm:$0xff]   ;;  %v2363_v27 = vld [vmem:[%s2561_s20 + $0x4] ss:$16 sps:$4 sm:$0xff]   ;;  %v2364_v48 = vld [vmem:[%s2561_s20 + $0x8] ss:$16 sps:$4 sm:$0xff]   ;;  %s2746_s13 = scalar_lea.vmem %s2826_s5, %s1871_s10 }
  0x14   : > { %2288 = vmatpush3.bf16.msra.mxu1 %v2324_v7  ;;  %1988 = vmatpush3.bf16.msra.mxu0 %v2324_v7  ;;  %v2347_v29 = vld [vmem:[%s2561_s20 + $0x1c4] ss:$16 sps:$4 sm:$0xff]   ;;  %v2349_v32 = vld [vmem:[%s2561_s20 + $0x1c0] ss:$16 sps:$4 sm:$0xff]   ;;  %v2369_v51 = vld [vmem:[%s2561_s20 + $0x2c] ss:$16 sps:$4 sm:$0xff]  }
  0x15   : > { %2281 = vmatprep.subr.bf16.mxu1 %v2325_v8  ;;  %1989 = vmatprep.subr.bf16.mxu0 %v2325_v8  ;;  %v2367_v30 = vld [vmem:[%s2561_s20 + $0x24] ss:$16 sps:$4 sm:$0xff]   ;;  %v2371_v34 = vld [vmem:[%s2561_s20 + $0x20] ss:$16 sps:$4 sm:$0xff]   ;;  %v2372_v53 = vld [vmem:[%s2561_s20 + $0x28] ss:$16 sps:$4 sm:$0xff]  }
  0x16   : > { %1045 = vmatprep.mubr.bf16.mxu0 %v2363_v27  ;;  %v2373_v35 = vld [vmem:[%s2561_s20 + $0x44] ss:$16 sps:$4 sm:$0xff]   ;;  %v2356_v40 = vld [vmem:[%s2561_s20 + $0x1e0] ss:$16 sps:$4 sm:$0xff]   ;;  %v2375_v55 = vld [vmem:[%s2561_s20 + $0x4c] ss:$16 sps:$4 sm:$0xff]  }
  0x17   : > { %v2354_v37 = vld [vmem:[%s2561_s20 + $0x1e4] ss:$16 sps:$4 sm:$0xff]   ;;  %v2377_v42 = vld [vmem:[%s2561_s20 + $0x40] ss:$16 sps:$4 sm:$0xff]   ;;  %v2378_v57 = vld [vmem:[%s2561_s20 + $0x48] ss:$16 sps:$4 sm:$0xff]  }
  0x18   : > { %2289 = vmatpush3.bf16.msra.mxu1 %v2326_v9  ;;  %1990 = vmatpush3.bf16.msra.mxu0 %v2326_v9  ;;  %v2379_v43 = vld [vmem:[%s2561_s20 + $0x64] ss:$16 sps:$4 sm:$0xff]   ;;  %v2383_v49 = vld [vmem:[%s2561_s20 + $0x60] ss:$16 sps:$4 sm:$0xff]   ;;  %v2381_v59 = vld [vmem:[%s2561_s20 + $0x6c] ss:$16 sps:$4 sm:$0xff]  }
  0x19   : > { %2282 = vmatprep.subr.bf16.mxu1 %v2327_v10  ;;  %1991 = vmatprep.subr.bf16.mxu0 %v2327_v10  ;;  %v2385_v50 = vld [vmem:[%s2561_s20 + $0x84] ss:$16 sps:$4 sm:$0xff]   ;;  %v2389_v52 = vld [vmem:[%s2561_s20 + $0x80] ss:$16 sps:$4 sm:$0xff]   ;;  %v2384_v61 = vld [vmem:[%s2561_s20 + $0x68] ss:$16 sps:$4 sm:$0xff]  }
  0x1a   : > { %v2391_v54 = vld [vmem:[%s2561_s20 + $0xa4] ss:$16 sps:$4 sm:$0xff]   ;;  %v2395_v56 = vld [vmem:[%s2561_s20 + $0xa0] ss:$16 sps:$4 sm:$0xff]   ;;  %v2387_v63 = vld [vmem:[%s2561_s20 + $0x8c] ss:$16 sps:$4 sm:$0xff]  }
  0x1b   : > { %v2397_v58 = vld [vmem:[%s2561_s20 + $0xc4] ss:$16 sps:$4 sm:$0xff]   ;;  %v2401_v60 = vld [vmem:[%s2561_s20 + $0xc0] ss:$16 sps:$4 sm:$0xff]   ;;  %v2390_v1 = vld [vmem:[%s2561_s20 + $0x88] ss:$16 sps:$4 sm:$0xff]  }
  0x1c   : > { %2290 = vmatpush3.bf16.msra.mxu1 %v2328_v12  ;;  %1992 = vmatpush3.bf16.msra.mxu0 %v2328_v12  ;;  %v2403_v62 = vld [vmem:[%s2561_s20 + $0xe4] ss:$16 sps:$4 sm:$0xff]   ;;  %v2407_v0 = vld [vmem:[%s2561_s20 + $0xe0] ss:$16 sps:$4 sm:$0xff]   ;;  %v2393_v3 = vld [vmem:[%s2561_s20 + $0xac] ss:$16 sps:$4 sm:$0xff]  }
  0x1d   : > { %2283 = vmatprep.subr.bf16.mxu1 %v2329_v13  ;;  %1993 = vmatprep.subr.bf16.mxu0 %v2329_v13  ;;  %v2409_v2 = vld [vmem:[%s2561_s20 + $0x104] ss:$16 sps:$4 sm:$0xff]   ;;  %v2413_v4 = vld [vmem:[%s2561_s20 + $0x100] ss:$16 sps:$4 sm:$0xff]   ;;  %v2396_v5 = vld [vmem:[%s2561_s20 + $0xa8] ss:$16 sps:$4 sm:$0xff]  }
  0x1e   : > { %v2415_v6 = vld [vmem:[%s2561_s20 + $0x124] ss:$16 sps:$4 sm:$0xff]   ;;  %v2399_v7 = vld [vmem:[%s2561_s20 + $0xcc] ss:$16 sps:$4 sm:$0xff]   ;;  %v2419_v8 = vld [vmem:[%s2561_s20 + $0x120] ss:$16 sps:$4 sm:$0xff]  }
  0x1f   : > { %v2402_v9 = vld [vmem:[%s2561_s20 + $0xc8] ss:$16 sps:$4 sm:$0xff]   ;;  %v2421_v10 = vld [vmem:[%s2561_s20 + $0x144] ss:$16 sps:$4 sm:$0xff]   ;;  %v2405_v11 = vld [vmem:[%s2561_s20 + $0xec] ss:$16 sps:$4 sm:$0xff]  }
  0x20   : > { %2291 = vmatpush3.bf16.msra.mxu1 %v2330_v14  ;;  %1994 = vmatpush3.bf16.msra.mxu0 %v2330_v14  ;;  %v2425_v12 = vld [vmem:[%s2561_s20 + $0x140] ss:$16 sps:$4 sm:$0xff]   ;;  %v2408_v13 = vld [vmem:[%s2561_s20 + $0xe8] ss:$16 sps:$4 sm:$0xff]   ;;  %v2427_v14 = vld [vmem:[%s2561_s20 + $0x164] ss:$16 sps:$4 sm:$0xff]  }
  0x21   : > { %2284 = vmatprep.subr.bf16.mxu1 %v2331_v15  ;;  %1995 = vmatprep.subr.bf16.mxu0 %v2331_v15  ;;  %v2411_v15 = vld [vmem:[%s2561_s20 + $0x10c] ss:$16 sps:$4 sm:$0xff]   ;;  %v2432_v27 = vld [vmem:[%s2561_s20 + $0x168] ss:$16 sps:$4 sm:$0xff]  }
  0x24   : > { %2292 = vmatpush3.bf16.msra.mxu1 %v2332_v16  ;;  %1996 = vmatpush3.bf16.msra.mxu0 %v2332_v16  ;;  %v2431_v16 = vld [vmem:[%s2561_s20 + $0x160] ss:$16 sps:$4 sm:$0xff]  }
  0x25   : > { %2093 = vmatprep.subr.bf16.mxu1 %v2336_v17  ;;  %v2414_v17 = vld [vmem:[%s2561_s20 + $0x108] ss:$16 sps:$4 sm:$0xff]  }
  0x27   : > { %1142 = vmatmul.mubr.bf16.vlgmr.msra.gmra.mrb[0].mxu1 %v2333_v18  ;;  %1046 = vmatmul.mubr.bf16.vlgmr.msra.gmra.mrb[0].mxu0 %v2361_v26  ;;  %v2417_v18 = vld [vmem:[%s2561_s20 + $0x12c] ss:$16 sps:$4 sm:$0xff]  }
  0x28   : > { %2094 = vmatpush3.bf16.msra.mxu1 %v2337_v19  ;;  %1149 = vmatprep.mubr.bf16.mxu1 %v2340_v20  ;;  %v2420_v19 = vld [vmem:[%s2561_s20 + $0x128] ss:$16 sps:$4 sm:$0xff]   ;;  %v2423_v20 = vld [vmem:[%s2561_s20 + $0x14c] ss:$16 sps:$4 sm:$0xff]  }
  0x29   : > { %2095 = vmatprep.subr.bf16.mxu1 %v2338_v21  ;;  %1053 = vmatprep.mubr.bf16.mxu0 %v2367_v30  ;;  %v2445_v21 = vld [vmem:[%s2691_s7] sm:$0xff]   ;;  %v2448_v26 = vld [vmem:[%s2691_s7 + $0x18] sm:$0xff]   ;;  %v2450_v30 = vld [vmem:[%s2691_s7 + $0x28] sm:$0xff]  }
  0x2a   : > { %2229 = vmatprep.subr.bf16.mxu0 %v2445_v21 }
  0x2b   : > { %2230 = vmatpush3.bf16.msra.mxu0 %v2445_v21 }
  0x2c   : > { %2096 = vmatpush3.bf16.msra.mxu1 %v2339_v22  ;;  %v2446_v22 = vld [vmem:[%s2691_s7 + $0x8] sm:$0xff]  }
  0x2d   : > { %2097 = vmatprep.subr.bf16.mxu1 %v2343_v24  ;;  %2231 = vmatprep.subr.bf16.mxu0 %v2446_v22  ;;  %v2429_v24 = vld [vmem:[%s2561_s20 + $0x16c] ss:$16 sps:$4 sm:$0xff]  }
  0x2f   : > { %1150 = vmatmul.mubr.bf16.gmra.mrb[4].mxu1 %v2342_v23  ;;  %1054 = vmatmul.mubr.bf16.gmra.mrb[4].mxu0 %v2371_v34  ;;  %v2426_v23 = vld [vmem:[%s2561_s20 + $0x148] ss:$16 sps:$4 sm:$0xff]  }
  0x30   : > { %2098 = vmatpush3.bf16.msra.mxu1 %v2344_v25  ;;  %1157 = vmatprep.mubr.bf16.mxu1 %v2347_v29  ;;  %v2447_v25 = vld [vmem:[%s2691_s7 + $0x10] sm:$0xff]   ;;  %v2449_v29 = vld [vmem:[%s2691_s7 + $0x20] sm:$0xff]   ;;  %v2452_v34 = vld [vmem:[%s2691_s7 + $0x38] sm:$0xff]  }
  0x31   : > { %2099 = vmatprep.subr.bf16.mxu1 %v2345_v28  ;;  %1061 = vmatprep.mubr.bf16.mxu0 %v2373_v35  ;;  %v2433_v28 = vld [vmem:[%s2561_s20 + $0x18c] ss:$16 sps:$4 sm:$0xff]   ;;  %v2438_v35 = vld [vmem:[%s2561_s20 + $0x1a8] ss:$16 sps:$4 sm:$0xff]  }
  0x32   : > { %2232 = vmatpush3.bf16.msra.mxu0 %v2446_v22 }
  0x33   : > { %2233 = vmatprep.subr.bf16.mxu0 %v2447_v25 }
  0x34   : > { %2100 = vmatpush3.bf16.msra.mxu1 %v2346_v31  ;;  %v2435_v31 = vld [vmem:[%s2561_s20 + $0x188] ss:$16 sps:$4 sm:$0xff]  }
  0x35   : > { %2101 = vmatprep.subr.bf16.mxu1 %v2350_v33  ;;  %v2451_v33 = vld [vmem:[%s2691_s7 + $0x30] sm:$0xff]  }
  0x36   : > { %2234 = vmatpush3.bf16.msra.mxu0 %v2447_v25 }
  0x37   : > { %1158 = vmatmul.mubr.bf16.gmra.mrb[8].mxu1 %v2349_v32  ;;  %1062 = vmatmul.mubr.bf16.gmra.mrb[8].mxu0 %v2377_v42  ;;  %v2436_v32 = vld [vmem:[%s2561_s20 + $0x1ac] ss:$16 sps:$4 sm:$0xff]  }
  0x38   : > { %2102 = vmatpush3.bf16.msra.mxu1 %v2351_v36  ;;  %1165 = vmatprep.mubr.bf16.mxu1 %v2354_v37  ;;  %v2439_v36 = vld [vmem:[%s2561_s20 + $0x1cc] ss:$16 sps:$4 sm:$0xff]   ;;  %v2441_v37 = vld [vmem:[%s2561_s20 + $0x1c8] ss:$16 sps:$4 sm:$0xff]  }
  0x39   : > { %2103 = vmatprep.subr.bf16.mxu1 %v2352_v38  ;;  %1069 = vmatprep.mubr.bf16.mxu0 %v2379_v43  ;;  %v2442_v38 = vld [vmem:[%s2561_s20 + $0x1ec] ss:$16 sps:$4 sm:$0xff]  }
  0x3a   : > { %2235 = vmatprep.subr.bf16.mxu0 %v2448_v26 }
  0x3b   : > { %2236 = vmatpush3.bf16.msra.mxu0 %v2448_v26 }
  0x3c   : > { %2104 = vmatpush3.bf16.msra.mxu1 %v2353_v39  ;;  %2237 = vmatprep.subr.bf16.mxu0 %v2449_v29  ;;  %v2444_v39 = vld [vmem:[%s2561_s20 + $0x1e8] ss:$16 sps:$4 sm:$0xff]  }
  0x3d   : > { %2105 = vmatprep.subr.bf16.mxu1 %v2357_v41 }
  0x3f   : > { %1166 = vmatmul.mubr.bf16.gmra.mrb[12].mxu1 %v2356_v40  ;;  %1070 = vmatmul.mubr.bf16.gmra.mrb[12].mxu0 %v2383_v49 }
  0x40   : > { %2106 = vmatpush3.bf16.msra.mxu1 %v2358_v44  ;;  %1206 = vmatprep.mubr.bf16.mxu1 %v2366_v45 }
  0x41   : > { %2107 = vmatprep.subr.bf16.mxu1 %v2359_v46  ;;  %1077 = vmatprep.mubr.bf16.mxu0 %v2385_v50 }
  0x42   : > { %2238 = vmatpush3.bf16.msra.mxu0 %v2449_v29 }
  0x43   : > { %2239 = vmatprep.subr.bf16.mxu0 %v2450_v30 }
  0x44   : > { %2108 = vmatpush3.bf16.msra.mxu1 %v2360_v47 }
  0x46   : > { %2240 = vmatpush3.bf16.msra.mxu0 %v2450_v30 }
  0x47   : > { %1207 = vmatmul.mubr.bf16.vlgmr.msra.gmra.mrb[16].mxu1 %v2364_v48  ;;  %1078 = vmatmul.mubr.bf16.gmra.mrb[16].mxu0 %v2389_v52 }
  0x48   : > { %1214 = vmatprep.mubr.bf16.mxu1 %v2369_v51  ;;  %1085 = vmatprep.mubr.bf16.mxu0 %v2391_v54 }
  0x49   : > { %2241 = vmatprep.subr.bf16.mxu0 %v2451_v33 }
  0x4a   : > { %2242 = vmatpush3.bf16.msra.mxu0 %v2451_v33 }
  0x4b   : > { %2243 = vmatprep.subr.bf16.mxu0 %v2452_v34 }
  0x4e   : > { %2244 = vmatpush3.bf16.msra.mxu0 %v2452_v34 }
  0x4f   : > { %1215 = vmatmul.mubr.bf16.gmra.mrb[20].mxu1 %v2372_v53  ;;  %1086 = vmatmul.mubr.bf16.gmra.mrb[20].mxu0 %v2395_v56 }
  0x50   : > { %1222 = vmatprep.mubr.bf16.mxu1 %v2375_v55  ;;  %1093 = vmatprep.mubr.bf16.mxu0 %v2397_v58 }
  0x57   : > { %1223 = vmatmul.mubr.bf16.gmra.mrb[24].mxu1 %v2378_v57  ;;  %1094 = vmatmul.mubr.bf16.gmra.mrb[24].mxu0 %v2401_v60 }
  0x58   : > { %1230 = vmatprep.mubr.bf16.mxu1 %v2381_v59  ;;  %1101 = vmatprep.mubr.bf16.mxu0 %v2403_v62 }
  0x5f   : > { %1231 = vmatmul.mubr.bf16.gmra.mrb[28].mxu1 %v2384_v61  ;;  %1102 = vmatmul.mubr.bf16.gmra.mrb[28].mxu0 %v2407_v0 }
  0x60   : > { %1238 = vmatprep.mubr.bf16.mxu1 %v2387_v63  ;;  %1109 = vmatprep.mubr.bf16.mxu0 %v2409_v2 }
  0x67   : > { %1239 = vmatmul.mubr.bf16.gmra.mrb[32].mxu1 %v2390_v1  ;;  %1110 = vmatmul.mubr.bf16.gmra.mrb[32].mxu0 %v2413_v4 }
  0x68   : > { %1246 = vmatprep.mubr.bf16.mxu1 %v2393_v3  ;;  %1117 = vmatprep.mubr.bf16.mxu0 %v2415_v6 }
  0x6f   : > { %1247 = vmatmul.mubr.bf16.gmra.mrb[36].mxu1 %v2396_v5  ;;  %1118 = vmatmul.mubr.bf16.gmra.mrb[36].mxu0 %v2419_v8 }
  0x70   : > { %1254 = vmatprep.mubr.bf16.mxu1 %v2399_v7  ;;  %1125 = vmatprep.mubr.bf16.mxu0 %v2421_v10 }
  0x77   : > { %1255 = vmatmul.mubr.bf16.gmra.mrb[40].mxu1 %v2402_v9  ;;  %1126 = vmatmul.mubr.bf16.gmra.mrb[40].mxu0 %v2425_v12 }
  0x78   : > { %1262 = vmatprep.mubr.bf16.mxu1 %v2405_v11  ;;  %1133 = vmatprep.mubr.bf16.mxu0 %v2427_v14 }
  0x7f   : > { %1263 = vmatmul.mubr.bf16.gmra.mrb[44].mxu1 %v2408_v13  ;;  %1134 = vmatmul.mubr.bf16.gmra.mrb[44].mxu0 %v2431_v16 }
  0x80   : > { %1270 = vmatprep.mubr.bf16.mxu1 %v2411_v15 }
  0x87   : > { %1271 = vmatmul.mubr.bf16.gmra.mrb[48].mxu1 %v2414_v17 }
  0x88   : > { %1278 = vmatprep.mubr.bf16.mxu1 %v2417_v18 }
  0x8f   : > { %1279 = vmatmul.mubr.bf16.gmra.mrb[52].mxu1 %v2420_v19 }
  0x90   : > { %1286 = vmatprep.mubr.bf16.mxu1 %v2423_v20 }
  0x97   : > { %1287 = vmatmul.mubr.bf16.gmra.mrb[56].mxu1 %v2426_v23 }
  0x98   : > { %1294 = vmatprep.mubr.bf16.mxu1 %v2429_v24 }
  0x9f   : > { %1295 = vmatmul.mubr.bf16.gmra.mrb[60].mxu1 %v2432_v27 }
  0xa0   : > { %1302 = vmatprep.mubr.bf16.mxu1 %v2433_v28 }
  0xa7   : > { %1303 = vmatmul.mubr.bf16.gmra.mrb[64].mxu1 %v2435_v31 }
  0xa8   : > { %1310 = vmatprep.mubr.bf16.mxu1 %v2436_v32 }
  0xaf   : > { %1311 = vmatmul.mubr.bf16.gmra.mrb[68].mxu1 %v2438_v35 }
  0xb0   : > { %1318 = vmatprep.mubr.bf16.mxu1 %v2439_v36 }
  0xb7   : > { %1319 = vmatmul.mubr.bf16.gmra.mrb[72].mxu1 %v2441_v37 }
  0xb8   : > { %1326 = vmatprep.mubr.bf16.mxu1 %v2442_v38 }
  0xbf   : > { %1327 = vmatmul.mubr.bf16.gmra.mrb[76].mxu1 %v2444_v39 }
  0xfa   : > { %v2069_v40 = vpop.f32.mrb[0].mxu1  ;;  %v1997_v46 = vpop.f32.mrb[0].mxu0 }
  0xfb   : > { %v2070_v41 = vpop.f32.mrb[1].mxu1  ;;  %v1998_v48 = vpop.f32.mrb[1].mxu0 }
  0xfc   : > { %v2712_v42 = vadd.f32 %v2070_v41, %v2069_v40  ;;  %v2072_v43 = vpop.f32.mrb[2].mxu1  ;;  %v1999_v50 = vadd.f32 %v1998_v48, %v1997_v46  ;;  %v2000_v51 = vpop.f32.mrb[2].mxu0 }
  0xfd   : > { %v2073_v44 = vpop.f32.mrb[3].mxu1  ;;  %v2001_v54 = vpop.f32.mrb[3].mxu0 }
  0xfe   : > { %v2714_v45 = vadd.f32 %v2073_v44, %v2072_v43  ;;  %v2002_v56 = vadd.f32 %v2001_v54, %v2000_v51 }
 0x102   : > { %v2075_v47 = vpop.f32.mrb[4].mxu1  ;;  %v2003_v58 = vpop.f32.mrb[4].mxu0 }
 0x103   : > { %v2076_v49 = vpop.f32.mrb[5].mxu1  ;;  %v2004_v60 = vpop.f32.mrb[5].mxu0 }
 0x104   : > { %v2716_v52 = vadd.f32 %v2076_v49, %v2075_v47  ;;  %v2078_v53 = vpop.f32.mrb[6].mxu1  ;;  %v2005_v62 = vadd.f32 %v2004_v60, %v2003_v58  ;;  %v2006_v63 = vpop.f32.mrb[6].mxu0 }
 0x105   : > { %v2079_v55 = vpop.f32.mrb[7].mxu1  ;;  %v2007_v2 = vpop.f32.mrb[7].mxu0 }
 0x106   : > { %v2718_v57 = vadd.f32 %v2079_v55, %v2078_v53  ;;  %v2008_v4 = vadd.f32 %v2007_v2, %v2006_v63 }
 0x10a   : > { %v2081_v59 = vpop.f32.mrb[8].mxu1  ;;  %v2009_v6 = vpop.f32.mrb[8].mxu0 }
 0x10b   : > { %v2082_v61 = vpop.f32.mrb[9].mxu1  ;;  %v2010_v8 = vpop.f32.mrb[9].mxu0 }
 0x10c   : > { %v2720_v0 = vadd.f32 %v2082_v61, %v2081_v59  ;;  %v2084_v1 = vpop.f32.mrb[10].mxu1  ;;  %v2011_v10 = vadd.f32 %v2010_v8, %v2009_v6  ;;  %v2012_v11 = vpop.f32.mrb[10].mxu0 }
 0x10d   : > { %v2085_v3 = vpop.f32.mrb[11].mxu1  ;;  %v2013_v14 = vpop.f32.mrb[11].mxu0 }
 0x10e   : > { %v2722_v5 = vadd.f32 %v2085_v3, %v2084_v1  ;;  %v2014_v16 = vadd.f32 %v2013_v14, %v2012_v11 }
 0x112   : > { %v2087_v7 = vpop.f32.mrb[12].mxu1  ;;  %v2015_v18 = vpop.f32.mrb[12].mxu0 }
 0x113   : > { %v2088_v9 = vpop.f32.mrb[13].mxu1  ;;  %v2016_v20 = vpop.f32.mrb[13].mxu0 }
 0x114   : > { %v2724_v12 = vadd.f32 %v2088_v9, %v2087_v7  ;;  %v2090_v13 = vpop.f32.mrb[14].mxu1  ;;  %v2017_v22 = vadd.f32 %v2016_v20, %v2015_v18  ;;  %v2018_v23 = vpop.f32.mrb[14].mxu0 }
 0x115   : > { %v2091_v15 = vpop.f32.mrb[15].mxu1  ;;  %v2019_v26 = vpop.f32.mrb[15].mxu0 }
 0x116   : > { %v2726_v17 = vadd.f32 %v2091_v15, %v2090_v13  ;;  %v2020_v28 = vadd.f32 %v2019_v26, %v2018_v23 }
 0x11a   : > { %v2109_v19 = vpop.f32.mrb[16].mxu1  ;;  %v2021_v32 = vpop.f32.mrb[16].mxu0 }
 0x11b   : > { %v2110_v21 = vpop.f32.mrb[17].mxu1  ;;  %v2022_v36 = vpop.f32.mrb[17].mxu0 }
 0x11c   : > { %v2111_v24 = vadd.f32 %v2110_v21, %v2109_v19  ;;  %v2112_v25 = vpop.f32.mrb[18].mxu1  ;;  %v2023_v38 = vadd.f32 %v2022_v36, %v2021_v32  ;;  %v2024_v39 = vpop.f32.mrb[18].mxu0 }
 0x11d   : > { %v2113_v27 = vpop.f32.mrb[19].mxu1  ;;  %v2025_v44 = vpop.f32.mrb[19].mxu0 }
 0x11e   : > { %v1209_v29 = vadd.f32 %v2111_v24, %v1999_v50  ;;  %v2114_v30 = vadd.f32 %v2113_v27, %v2112_v25  ;;  %v2026_v47 = vadd.f32 %v2025_v44, %v2024_v39 }
 0x120   : > { %v1212_v31 = vadd.f32 %v2114_v30, %v2002_v56  ;;  %v1434_v33 = vmax.f32 %v1209_v29, 0.0 }
 0x122   : > { %v1435_v34 = vmax.f32 %v1212_v31, 0.0  ;;  %v2115_v35 = vpop.f32.mrb[20].mxu1  ;;  %v2027_v51 = vpop.f32.mrb[20].mxu0 }
 0x123   : > { %v2116_v37 = vpop.f32.mrb[21].mxu1  ;;  %v2028_v56 = vpop.f32.mrb[21].mxu0 }
 0x124   : > { %v2117_v40 = vadd.f32 %v2116_v37, %v2115_v35  ;;  %v2118_v41 = vpop.f32.mrb[22].mxu1  ;;  %v1466_v43 = vpack.c.bf16 %v1435_v34, %v1434_v33  ;;  %v2029_v59 = vadd.f32 %v2028_v56, %v2027_v51  ;;  %v2030_v60 = vpop.f32.mrb[22].mxu0 }
 0x125   : > { %v2119_v46 = vpop.f32.mrb[23].mxu1  ;;  %v2031_v2 = vpop.f32.mrb[23].mxu0 }
 0x126   : > { %v1217_v48 = vadd.f32 %v2117_v40, %v2005_v62  ;;  %v2120_v49 = vadd.f32 %v2119_v46, %v2118_v41  ;;  %2245 = vmatprep.mubr.bf16.mxu0 %v1466_v43  ;;  %v2032_v6 = vadd.f32 %v2031_v2, %v2030_v60 }
 0x128   : > { %v1220_v50 = vadd.f32 %v2120_v49, %v2008_v4  ;;  %v1436_v53 = vmax.f32 %v1217_v48, 0.0 }
 0x12a   : > { %v1437_v54 = vmax.f32 %v1220_v50, 0.0  ;;  %v2121_v55 = vpop.f32.mrb[24].mxu1  ;;  %v2033_v9 = vpop.f32.mrb[24].mxu0 }
 0x12b   : > { %v2122_v58 = vpop.f32.mrb[25].mxu1  ;;  %v2034_v14 = vpop.f32.mrb[25].mxu0 }
 0x12c   : > { %v1467_v61 = vpack.c.bf16 %v1437_v54, %v1436_v53  ;;  %v2123_v63 = vadd.f32 %v2122_v58, %v2121_v55  ;;  %v2124_v1 = vpop.f32.mrb[26].mxu1  ;;  %v2035_v18 = vadd.f32 %v2034_v14, %v2033_v9  ;;  %v2036_v19 = vpop.f32.mrb[26].mxu0 }
 0x12d   : > { %v2125_v3 = vpop.f32.mrb[27].mxu1  ;;  %v2037_v24 = vpop.f32.mrb[27].mxu0 }
 0x12e   : > { %v1225_v7 = vadd.f32 %v2123_v63, %v2011_v10  ;;  %v2126_v8 = vadd.f32 %v2125_v3, %v2124_v1  ;;  %2246 = vmatmul.mubr.bf16.vlgmr.msra.gmra.mrb[48].mxu0 %v1467_v61  ;;  %v2038_v26 = vadd.f32 %v2037_v24, %v2036_v19 }
 0x130   : > { %v1228_v62 = vadd.f32 %v2126_v8, %v2014_v16  ;;  %v1438_v4 = vmax.f32 %v1225_v7, 0.0 }
 0x132   : > { %v1439_v11 = vmax.f32 %v1228_v62, 0.0  ;;  %v2127_v13 = vpop.f32.mrb[28].mxu1  ;;  %v2039_v30 = vpop.f32.mrb[28].mxu0 }
 0x133   : > { %v2128_v15 = vpop.f32.mrb[29].mxu1  ;;  %v2040_v33 = vpop.f32.mrb[29].mxu0 }
 0x134   : > { %v2129_v20 = vadd.f32 %v2128_v15, %v2127_v13  ;;  %v2130_v21 = vpop.f32.mrb[30].mxu1  ;;  %v1468_v23 = vpack.c.bf16 %v1439_v11, %v1438_v4  ;;  %v2041_v35 = vadd.f32 %v2040_v33, %v2039_v30  ;;  %v2042_v36 = vpop.f32.mrb[30].mxu0 }
 0x135   : > { %v2131_v25 = vpop.f32.mrb[31].mxu1  ;;  %v2043_v41 = vpop.f32.mrb[31].mxu0 }
 0x136   : > { %v1233_v27 = vadd.f32 %v2129_v20, %v2017_v22  ;;  %v2132_v29 = vadd.f32 %v2131_v25, %v2130_v21  ;;  %2249 = vmatprep.mubr.bf16.mxu0 %v1468_v23  ;;  %v2044_v44 = vadd.f32 %v2043_v41, %v2042_v36 }
 0x138   : > { %v1236_v10 = vadd.f32 %v2132_v29, %v2020_v28  ;;  %v1440_v16 = vmax.f32 %v1233_v27, 0.0 }
 0x13a   : > { %v1441_v31 = vmax.f32 %v1236_v10, 0.0  ;;  %v2133_v32 = vpop.f32.mrb[32].mxu1  ;;  %v2045_v49 = vpop.f32.mrb[32].mxu0 }
 0x13b   : > { %v2134_v34 = vpop.f32.mrb[33].mxu1  ;;  %v2046_v53 = vpop.f32.mrb[33].mxu0 }
 0x13c   : > { %v2135_v37 = vadd.f32 %v2134_v34, %v2133_v32  ;;  %v2136_v39 = vpop.f32.mrb[34].mxu1  ;;  %v1469_v40 = vpack.c.bf16 %v1441_v31, %v1440_v16  ;;  %v2047_v55 = vadd.f32 %v2046_v53, %v2045_v49  ;;  %v2048_v56 = vpop.f32.mrb[34].mxu0 }
 0x13d   : > { %v2137_v43 = vpop.f32.mrb[35].mxu1  ;;  %v2049_v63 = vpop.f32.mrb[35].mxu0 }
 0x13e   : > { %v1241_v46 = vadd.f32 %v2135_v37, %v2023_v38  ;;  %v2138_v48 = vadd.f32 %v2137_v43, %v2136_v39  ;;  %2250 = vmatmul.mubr.bf16.gmra.mrb[52].mxu0 %v1469_v40  ;;  %v2050_v2 = vadd.f32 %v2049_v63, %v2048_v56 }
 0x140   : > { %v1244_v22 = vadd.f32 %v2138_v48, %v2026_v47  ;;  %v1442_v28 = vmax.f32 %v1241_v46, 0.0 }
 0x142   : > { %v1443_v50 = vmax.f32 %v1244_v22, 0.0  ;;  %v2139_v51 = vpop.f32.mrb[36].mxu1  ;;  %v2051_v8 = vpop.f32.mrb[36].mxu0 }
 0x143   : > { %v2140_v54 = vpop.f32.mrb[37].mxu1  ;;  %v2052_v4 = vpop.f32.mrb[37].mxu0 }
 0x144   : > { %v2141_v58 = vadd.f32 %v2140_v54, %v2139_v51  ;;  %v2142_v60 = vpop.f32.mrb[38].mxu1  ;;  %v1470_v61 = vpack.c.bf16 %v1443_v50, %v1442_v28  ;;  %v2053_v13 = vadd.f32 %v2052_v4, %v2051_v8  ;;  %v2054_v14 = vpop.f32.mrb[38].mxu0 }
 0x145   : > { %v2143_v1 = vpop.f32.mrb[39].mxu1  ;;  %v2055_v21 = vpop.f32.mrb[39].mxu0 }
 0x146   : > { %v1249_v3 = vadd.f32 %v2141_v58, %v2029_v59  ;;  %v2144_v7 = vadd.f32 %v2143_v1, %v2142_v60  ;;  %2253 = vmatprep.mubr.bf16.mxu0 %v1470_v61  ;;  %v2056_v24 = vadd.f32 %v2055_v21, %v2054_v14 }
 0x148   : > { %v1252_v38 = vadd.f32 %v2144_v7, %v2032_v6  ;;  %v1444_v47 = vmax.f32 %v1249_v3, 0.0 }
 0x14a   : > { %v1445_v62 = vmax.f32 %v1252_v38, 0.0  ;;  %v2145_v9 = vpop.f32.mrb[40].mxu1  ;;  %v2057_v29 = vpop.f32.mrb[40].mxu0 }
 0x14b   : > { %v2146_v11 = vpop.f32.mrb[41].mxu1  ;;  %v2058_v16 = vpop.f32.mrb[41].mxu0 }
 0x14c   : > { %v2147_v15 = vadd.f32 %v2146_v11, %v2145_v9  ;;  %v2148_v19 = vpop.f32.mrb[42].mxu1  ;;  %v1471_v20 = vpack.c.bf16 %v1445_v62, %v1444_v47  ;;  %v2059_v32 = vadd.f32 %v2058_v16, %v2057_v29  ;;  %v2060_v33 = vpop.f32.mrb[42].mxu0 }
 0x14d   : > { %v2149_v23 = vpop.f32.mrb[43].mxu1  ;;  %v2061_v39 = vpop.f32.mrb[43].mxu0 }
 0x14e   : > { %v1257_v25 = vadd.f32 %v2147_v15, %v2035_v18  ;;  %v2150_v27 = vadd.f32 %v2149_v23, %v2148_v19  ;;  %2254 = vmatmul.mubr.bf16.gmra.mrb[56].mxu0 %v1471_v20  ;;  %v2062_v41 = vadd.f32 %v2061_v39, %v2060_v33 }
 0x150   : > { %v1260_v59 = vadd.f32 %v2150_v27, %v2038_v26  ;;  %v1446_v6 = vmax.f32 %v1257_v25, 0.0 }
 0x152   : > { %v1447_v10 = vmax.f32 %v1260_v59, 0.0  ;;  %v2151_v30 = vpop.f32.mrb[44].mxu1  ;;  %v2063_v48 = vpop.f32.mrb[44].mxu0 }
 0x153   : > { %v2152_v31 = vpop.f32.mrb[45].mxu1  ;;  %v2064_v28 = vpop.f32.mrb[45].mxu0 }
 0x154   : > { %v2153_v34 = vadd.f32 %v2152_v31, %v2151_v30  ;;  %v2154_v36 = vpop.f32.mrb[46].mxu1  ;;  %v1472_v37 = vpack.c.bf16 %v1447_v10, %v1446_v6  ;;  %v2065_v51 = vadd.f32 %v2064_v28, %v2063_v48  ;;  %v2066_v53 = vpop.f32.mrb[46].mxu0 }
 0x155   : > { %v2155_v40 = vpop.f32.mrb[47].mxu1  ;;  %v2067_v60 = vpop.f32.mrb[47].mxu0 }
 0x156   : > { %v1265_v43 = vadd.f32 %v2153_v34, %v2041_v35  ;;  %v2156_v46 = vadd.f32 %v2155_v40, %v2154_v36  ;;  %2257 = vmatprep.mubr.bf16.mxu0 %v1472_v37  ;;  %v2068_v63 = vadd.f32 %v2067_v60, %v2066_v53 }
 0x158   : > { %v1268_v18 = vadd.f32 %v2156_v46, %v2044_v44  ;;  %v1448_v26 = vmax.f32 %v1265_v43, 0.0 }
 0x15a   : > { %v1449_v22 = vmax.f32 %v1268_v18, 0.0  ;;  %v2157_v49 = vpop.f32.mrb[48].mxu1 }
 0x15b   : > { %v2158_v50 = vpop.f32.mrb[49].mxu1 }
 0x15c   : > { %v2159_v54 = vadd.f32 %v2158_v50, %v2157_v49  ;;  %v2160_v56 = vpop.f32.mrb[50].mxu1  ;;  %v1473_v58 = vpack.c.bf16 %v1449_v22, %v1448_v26 }
 0x15d   : > { %v2161_v61 = vpop.f32.mrb[51].mxu1 }
 0x15e   : > { %v1273_v1 = vadd.f32 %v2159_v54, %v2047_v55  ;;  %v2162_v3 = vadd.f32 %v2161_v61, %v2160_v56  ;;  %2258 = vmatmul.mubr.bf16.gmra.mrb[60].mxu0 %v1473_v58 }
 0x160   : > { %v1276_v35 = vadd.f32 %v2162_v3, %v2050_v2  ;;  %v1450_v7 = vmax.f32 %v1273_v1, 0.0 }
 0x162   : > { %v1451_v44 = vmax.f32 %v1276_v35, 0.0  ;;  %v2163_v38 = vpop.f32.mrb[52].mxu1 }
 0x163   : > { %v2164_v8 = vpop.f32.mrb[53].mxu1 }
 0x164   : > { %v2165_v47 = vadd.f32 %v2164_v8, %v2163_v38  ;;  %v2166_v62 = vpop.f32.mrb[54].mxu1  ;;  %v1474_v9 = vpack.c.bf16 %v1451_v44, %v1450_v7 }
 0x165   : > { %v2167_v4 = vpop.f32.mrb[55].mxu1 }
 0x166   : > { %v1281_v11 = vadd.f32 %v2165_v47, %v2053_v13  ;;  %v2168_v14 = vadd.f32 %v2167_v4, %v2166_v62  ;;  %2261 = vmatprep.mubr.bf16.mxu0 %v1474_v9 }
 0x168   : > { %v1284_v15 = vadd.f32 %v2168_v14, %v2056_v24  ;;  %v1452_v19 = vmax.f32 %v1281_v11, 0.0 }
 0x16a   : > { %v1453_v20 = vmax.f32 %v1284_v15, 0.0  ;;  %v2169_v21 = vpop.f32.mrb[56].mxu1 }
 0x16b   : > { %v2170_v23 = vpop.f32.mrb[57].mxu1 }
 0x16c   : > { %v2171_v55 = vadd.f32 %v2170_v23, %v2169_v21  ;;  %v2172_v25 = vpop.f32.mrb[58].mxu1  ;;  %v1475_v27 = vpack.c.bf16 %v1453_v20, %v1452_v19 }
 0x16d   : > { %v2173_v2 = vpop.f32.mrb[59].mxu1 }
 0x16e   : > { %v1289_v59 = vadd.f32 %v2171_v55, %v2059_v32  ;;  %v2174_v29 = vadd.f32 %v2173_v2, %v2172_v25  ;;  %2262 = vmatmul.mubr.bf16.gmra.mrb[64].mxu0 %v1475_v27 }
 0x170   : > { %v1292_v6 = vadd.f32 %v2174_v29, %v2062_v41  ;;  %v1454_v10 = vmax.f32 %v1289_v59, 0.0 }
 0x172   : > { %v1455_v30 = vmax.f32 %v1292_v6, 0.0  ;;  %v2175_v16 = vpop.f32.mrb[60].mxu1 }
 0x173   : > { %v2176_v31 = vpop.f32.mrb[61].mxu1 }
 0x174   : > { %v2177_v13 = vadd.f32 %v2176_v31, %v2175_v16  ;;  %v2178_v33 = vpop.f32.mrb[62].mxu1  ;;  %v1476_v34 = vpack.c.bf16 %v1455_v30, %v1454_v10 }
 0x175   : > { %v2179_v24 = vpop.f32.mrb[63].mxu1 }
 0x176   : > { %v1297_v36 = vadd.f32 %v2177_v13, %v2065_v51  ;;  %v2180_v37 = vadd.f32 %v2179_v24, %v2178_v33  ;;  %2265 = vmatprep.mubr.bf16.mxu0 %v1476_v34 }
 0x178   : > { %v1300_v39 = vadd.f32 %v2180_v37, %v2068_v63  ;;  %v1456_v40 = vmax.f32 %v1297_v36, 0.0 }
 0x17a   : > { %v1457_v43 = vmax.f32 %v1300_v39, 0.0  ;;  %v2181_v46 = vpop.f32.mrb[64].mxu1 }
 0x17b   : > { %v2182_v18 = vpop.f32.mrb[65].mxu1 }
 0x17c   : > { %v2183_v32 = vadd.f32 %v2182_v18, %v2181_v46  ;;  %v2184_v48 = vpop.f32.mrb[66].mxu1  ;;  %v1477_v26 = vpack.c.bf16 %v1457_v43, %v1456_v40 }
 0x17d   : > { %v2185_v41 = vpop.f32.mrb[67].mxu1 }
 0x17e   : > { %v1305_v22 = vadd.f32 %v2183_v32, %v2712_v42  ;;  %v2186_v49 = vadd.f32 %v2185_v41, %v2184_v48  ;;  %2266 = vmatmul.mubr.bf16.gmra.mrb[68].mxu0 %v1477_v26 }
 0x180   : > { %v1308_v28 = vadd.f32 %v2186_v49, %v2714_v45  ;;  %v1458_v50 = vmax.f32 %v1305_v22, 0.0 }
 0x182   : > { %v1459_v53 = vmax.f32 %v1308_v28, 0.0  ;;  %v2187_v51 = vpop.f32.mrb[68].mxu1 }
 0x183   : > { %v2188_v54 = vpop.f32.mrb[69].mxu1 }
 0x184   : > { %v2189_v56 = vadd.f32 %v2188_v54, %v2187_v51  ;;  %v2190_v58 = vpop.f32.mrb[70].mxu1  ;;  %v1478_v60 = vpack.c.bf16 %v1459_v53, %v1458_v50 }
 0x185   : > { %v2191_v61 = vpop.f32.mrb[71].mxu1 }
 0x186   : > { %v1313_v63 = vadd.f32 %v2189_v56, %v2716_v52  ;;  %v2192_v1 = vadd.f32 %v2191_v61, %v2190_v58  ;;  %2269 = vmatprep.mubr.bf16.mxu0 %v1478_v60 }
 0x188   : > { %v1316_v3 = vadd.f32 %v2192_v1, %v2718_v57  ;;  %v1460_v35 = vmax.f32 %v1313_v63, 0.0 }
 0x18a   : > { %v1461_v42 = vmax.f32 %v1316_v3, 0.0  ;;  %v2193_v7 = vpop.f32.mrb[72].mxu1 }
 0x18b   : > { %v2194_v44 = vpop.f32.mrb[73].mxu1 }
 0x18c   : > { %v2195_v38 = vadd.f32 %v2194_v44, %v2193_v7  ;;  %v2196_v45 = vpop.f32.mrb[74].mxu1  ;;  %v1479_v8 = vpack.c.bf16 %v1461_v42, %v1460_v35 }
 0x18d   : > { %v2197_v47 = vpop.f32.mrb[75].mxu1 }
 0x18e   : > { %v1321_v62 = vadd.f32 %v2195_v38, %v2720_v0  ;;  %v2198_v9 = vadd.f32 %v2197_v47, %v2196_v45  ;;  %2270 = vmatmul.mubr.bf16.gmra.mrb[72].mxu0 %v1479_v8 }
 0x190   : > { %v1324_v4 = vadd.f32 %v2198_v9, %v2722_v5  ;;  %v1462_v11 = vmax.f32 %v1321_v62, 0.0  ;;  %v2741_v5 = vld [vmem:[%s296_s9] ss:$0 sm:$0xff] }
 0x192   : > { %v1463_v52 = vmax.f32 %v1324_v4, 0.0  ;;  %v2199_v14 = vpop.f32.mrb[76].mxu1 }
 0x193   : > { %v2200_v57 = vpop.f32.mrb[77].mxu1 }
 0x194   : > { %v2201_v15 = vadd.f32 %v2200_v57, %v2199_v14  ;;  %v2202_v19 = vpop.f32.mrb[78].mxu1  ;;  %v1480_v20 = vpack.c.bf16 %v1463_v52, %v1462_v11 }
 0x195   : > { %v2203_v21 = vpop.f32.mrb[79].mxu1 }
 0x196   : > { %v1329_v23 = vadd.f32 %v2201_v15, %v2724_v12  ;;  %v2204_v55 = vadd.f32 %v2203_v21, %v2202_v19  ;;  %2273 = vmatprep.mubr.bf16.mxu0 %v1480_v20 }
 0x198   : > { %v1332_v0 = vadd.f32 %v2204_v55, %v2726_v17  ;;  %v1464_v25 = vmax.f32 %v1329_v23, 0.0 }
 0x19a   : > { %v1465_v27 = vmax.f32 %v1332_v0, 0.0 }
 0x19c   : > { %v1481_v2 = vpack.c.bf16 %v1465_v27, %v1464_v25 }
 0x19e   : > { %2274 = vmatmul.mubr.bf16.gmra.mrb[76].mxu0 %v1481_v2 }
 0x201   : > { %v2247_v12 = vpop.f32.mrb[48].mxu0 }
 0x202   : > { %v1596_v17 = vadd.f32 %v2247_v12, %v2741_v5  ;;  %v1587_v59 = vpop.f32.mrb[49].mxu0 }
 0x203   : > { %v1588_v29 = vadd.f32 %v2741_v5, %v1587_v59  ;;  %v2248_v6 = vpop.f32.mrb[50].mxu0 }
 0x204   : > { %1716 = vst [vmem:[%s2746_s13 + $0x10] sm:$0xff] %v1596_v17  ;;  %v1599_v10 = vadd.f32 %v2248_v6, %v2741_v5  ;;  %v1590_v30 = vpop.f32.mrb[51].mxu0 }
 0x205   : > { %1714 = vst [vmem:[%s2746_s13] sm:$0xff] %v1588_v29  ;;  %v1591_v16 = vadd.f32 %v2741_v5, %v1590_v30 }
 0x206   : > { %1717 = vst [vmem:[%s2746_s13 + $0x18] sm:$0xff] %v1599_v10 }
 0x207   : > { %1715 = vst [vmem:[%s2746_s13 + $0x8] sm:$0xff] %v1591_v16 }
 0x211   : > { %v2251_v31 = vpop.f32.mrb[52].mxu0 }
 0x212   : > { %v1612_v13 = vadd.f32 %v2251_v31, %v2741_v5  ;;  %v1603_v33 = vpop.f32.mrb[53].mxu0 }
 0x213   : > { %v1604_v34 = vadd.f32 %v2741_v5, %v1603_v33  ;;  %v2252_v24 = vpop.f32.mrb[54].mxu0 }
 0x214   : > { %1720 = vst [vmem:[%s2746_s13 + $0x30] sm:$0xff] %v1612_v13  ;;  %v1615_v36 = vadd.f32 %v2252_v24, %v2741_v5  ;;  %v1606_v37 = vpop.f32.mrb[55].mxu0 }
 0x215   : > { %1718 = vst [vmem:[%s2746_s13 + $0x20] sm:$0xff] %v1604_v34  ;;  %v1607_v39 = vadd.f32 %v2741_v5, %v1606_v37 }
 0x216   : > { %1721 = vst [vmem:[%s2746_s13 + $0x38] sm:$0xff] %v1615_v36 }
 0x217   : > { %1719 = vst [vmem:[%s2746_s13 + $0x28] sm:$0xff] %v1607_v39 }
 0x221   : > { %v2255_v40 = vpop.f32.mrb[56].mxu0 }
 0x222   : > { %v1628_v43 = vadd.f32 %v2255_v40, %v2741_v5  ;;  %v1619_v46 = vpop.f32.mrb[57].mxu0 }
 0x223   : > { %v1620_v18 = vadd.f32 %v2741_v5, %v1619_v46  ;;  %v2256_v32 = vpop.f32.mrb[58].mxu0 }
 0x224   : > { %1724 = vst [vmem:[%s2746_s13 + $0x50] sm:$0xff] %v1628_v43  ;;  %v1631_v48 = vadd.f32 %v2256_v32, %v2741_v5  ;;  %v1622_v26 = vpop.f32.mrb[59].mxu0 }
 0x225   : > { %1722 = vst [vmem:[%s2746_s13 + $0x40] sm:$0xff] %v1620_v18  ;;  %v1623_v41 = vadd.f32 %v2741_v5, %v1622_v26 }
 0x226   : > { %1725 = vst [vmem:[%s2746_s13 + $0x58] sm:$0xff] %v1631_v48 }
 0x227   : > { %1723 = vst [vmem:[%s2746_s13 + $0x48] sm:$0xff] %v1623_v41 }
 0x231   : > { %v2259_v22 = vpop.f32.mrb[60].mxu0 }
 0x232   : > { %v1644_v49 = vadd.f32 %v2259_v22, %v2741_v5  ;;  %v1635_v28 = vpop.f32.mrb[61].mxu0 }
 0x233   : > { %v1636_v50 = vadd.f32 %v2741_v5, %v1635_v28  ;;  %v2260_v53 = vpop.f32.mrb[62].mxu0 }
 0x234   : > { %1728 = vst [vmem:[%s2746_s13 + $0x70] sm:$0xff] %v1644_v49  ;;  %v1647_v51 = vadd.f32 %v2260_v53, %v2741_v5  ;;  %v1638_v54 = vpop.f32.mrb[63].mxu0 }
 0x235   : > { %1726 = vst [vmem:[%s2746_s13 + $0x60] sm:$0xff] %v1636_v50  ;;  %v1639_v56 = vadd.f32 %v2741_v5, %v1638_v54 }
 0x236   : > { %1729 = vst [vmem:[%s2746_s13 + $0x78] sm:$0xff] %v1647_v51 }
 0x237   : > { %1727 = vst [vmem:[%s2746_s13 + $0x68] sm:$0xff] %v1639_v56 }
 0x241   : > { %v2263_v58 = vpop.f32.mrb[64].mxu0 }
 0x242   : > { %v1660_v60 = vadd.f32 %v2263_v58, %v2741_v5  ;;  %v1651_v61 = vpop.f32.mrb[65].mxu0 }
 0x243   : > { %v1652_v63 = vadd.f32 %v2741_v5, %v1651_v61  ;;  %v2264_v1 = vpop.f32.mrb[66].mxu0 }
 0x244   : > { %1732 = vst [vmem:[%s2746_s13 + $0x90] sm:$0xff] %v1660_v60  ;;  %v1663_v3 = vadd.f32 %v2264_v1, %v2741_v5  ;;  %v1654_v35 = vpop.f32.mrb[67].mxu0 }
 0x245   : > { %1730 = vst [vmem:[%s2746_s13 + $0x80] sm:$0xff] %v1652_v63  ;;  %v1655_v42 = vadd.f32 %v2741_v5, %v1654_v35 }
 0x246   : > { %1733 = vst [vmem:[%s2746_s13 + $0x98] sm:$0xff] %v1663_v3 }
 0x247   : > { %1731 = vst [vmem:[%s2746_s13 + $0x88] sm:$0xff] %v1655_v42 }
 0x251   : > { %v2267_v7 = vpop.f32.mrb[68].mxu0 }
 0x252   : > { %v1676_v44 = vadd.f32 %v2267_v7, %v2741_v5  ;;  %v1667_v38 = vpop.f32.mrb[69].mxu0 }
 0x253   : > { %v1668_v45 = vadd.f32 %v2741_v5, %v1667_v38  ;;  %v2268_v8 = vpop.f32.mrb[70].mxu0 }
 0x254   : > { %1736 = vst [vmem:[%s2746_s13 + $0xb0] sm:$0xff] %v1676_v44  ;;  %v1679_v47 = vadd.f32 %v2268_v8, %v2741_v5  ;;  %v1670_v62 = vpop.f32.mrb[71].mxu0 }
 0x255   : > { %1734 = vst [vmem:[%s2746_s13 + $0xa0] sm:$0xff] %v1668_v45  ;;  %v1671_v9 = vadd.f32 %v2741_v5, %v1670_v62 }
 0x256   : > { %1737 = vst [vmem:[%s2746_s13 + $0xb8] sm:$0xff] %v1679_v47 }
 0x257   : > { %1735 = vst [vmem:[%s2746_s13 + $0xa8] sm:$0xff] %v1671_v9 }
 0x261   : > { %v2271_v4 = vpop.f32.mrb[72].mxu0 }
 0x262   : > { %v1692_v11 = vadd.f32 %v2271_v4, %v2741_v5  ;;  %v1683_v52 = vpop.f32.mrb[73].mxu0 }
 0x263   : > { %v1684_v14 = vadd.f32 %v2741_v5, %v1683_v52  ;;  %v2272_v57 = vpop.f32.mrb[74].mxu0 }
 0x264   : > { %1740 = vst [vmem:[%s2746_s13 + $0xd0] sm:$0xff] %v1692_v11  ;;  %v1695_v15 = vadd.f32 %v2272_v57, %v2741_v5  ;;  %v1686_v19 = vpop.f32.mrb[75].mxu0 }
 0x265   : > { %1738 = vst [vmem:[%s2746_s13 + $0xc0] sm:$0xff] %v1684_v14  ;;  %v1687_v20 = vadd.f32 %v2741_v5, %v1686_v19 }
 0x266   : > { %1741 = vst [vmem:[%s2746_s13 + $0xd8] sm:$0xff] %v1695_v15 }
 0x267   : > { %1739 = vst [vmem:[%s2746_s13 + $0xc8] sm:$0xff] %v1687_v20 }
 0x271   : > { %v2275_v21 = vpop.f32.mrb[76].mxu0 }
 0x272   : > { %v1708_v23 = vadd.f32 %v2275_v21, %v2741_v5  ;;  %v1699_v55 = vpop.f32.mrb[77].mxu0 }
 0x273   : > { %v1700_v0 = vadd.f32 %v2741_v5, %v1699_v55  ;;  %v2276_v25 = vpop.f32.mrb[78].mxu0 }
 0x274   : > { %1744 = vst [vmem:[%s2746_s13 + $0xf0] sm:$0xff] %v1708_v23  ;;  %v1711_v27 = vadd.f32 %v2276_v25, %v2741_v5  ;;  %v1702_v2 = vpop.f32.mrb[79].mxu0 }
 0x275   : > { %1742 = vst [vmem:[%s2746_s13 + $0xe0] sm:$0xff] %v1700_v0  ;;  %v1703_v12 = vadd.f32 %v2741_v5, %v1702_v2 }
 0x276   : > { %1745 = vst [vmem:[%s2746_s13 + $0xf8] sm:$0xff] %v1711_v27 }
 0x277   : > { %1743 = vst [vmem:[%s2746_s13 + $0xe8] sm:$0xff] %v1703_v12 }
 0x278 PF: > { %s16_s22 = sadd.s32 1, %s2475_s22   ;;  %s2827_s20 = smov %s2471_s21 }
 0x279   : > { %p13_p6 = scmp.ge.s32.totalorder %s16_s22, 4   ;;  %s2828_s21 = smov %s2830_s0 }
 0x27b   :  { %15 = sbr.rel (!%p13_p6) target bundleno = 2 (0x2), region = 83 }

</bundles_post_ra>
